<compile_context>
chip_gen: v7x
topology: tpu7x:2x2x1
jax: 0.10.0
libtpu: 0.0.40
codegen_flags: <defaults>
</compile_context>

<pallas_src>
import functools
import numpy as np
import jax
import jax.numpy as jnp
from jax.experimental import pallas as pl
from jax.experimental.pallas import tpu as pltpu


def _round_up(n, m):
    return ((n + m - 1) // m) * m


def _conv1d_toeplitz(w, B, rows_pad, cols_pad):
    """Conv1d(k=3, pad=1) over length B -> dense [rows_pad, cols_pad] matrix (zero padded)."""
    Cout, Cin, K = w.shape
    pad = K // 2
    M = np.zeros((rows_pad, cols_pad), np.float32)
    for co in range(Cout):
        for ci in range(Cin):
            for k in range(K):
                for lo in range(B):
                    li = lo + k - pad
                    if 0 <= li < B:
                        M[ci * B + li, co * B + lo] = w[co, ci, k]
    return M


# ------------------------------ Pallas kernel --------------------------------

def gated_gnn_kernel(
    h1_p, out_dim, tile_n,            # python ints (bound via functools.partial)
    # scalar-prefetch (SMEM)
    tid_ref,                          # [S] int32 node-tile id per work item
    ebk_ref,                          # [S] int32 edge-block id per work item
    ini_ref,                          # [S] int32 1 => zero the accumulator
    fin_ref,                          # [S] int32 1 => finalize (W1 + LN + relu) this tile
    edg_ref,                          # [S] int32 1 => this step carries an edge block
    # VMEM inputs
    x_ref,                            # [TILE_N, XP]  node features (+ W1-bias carrier)
    edge_ref,                         # [TILE_E, EP]  packed [edge_attr | 1 | x_src | 1]
    dst_ref,                          # [1, TILE_E]   int32 dst per edge (dst-sorted)
    wa_ref,                           # bf16 [EP, H1_P+DP] block-diag (conv1-Toeplitz ⊕ W2)
    m2_ref,                           # bf16 [H1_P, H2_P]  conv2 Toeplitz
    b2_ref,                           # f32  [1, H2_P]     conv2 bias (+ fc-bias carrier)
    fcw_ref,                          # bf16 [H2_P, DP]    fc weight (+ fc bias row)
    w1w_ref,                          # bf16 [XP, DP]      W1 weight (+ bias row)
    gamma_ref, beta_ref,              # f32  [1, DP]       LayerNorm affine (0 on pad lanes)
    out_ref,                          # [TILE_N, DP]
    acc_ref,                          # VMEM scratch [TILE_N, DP] f32 aggregation accumulator
):
    s = pl.program_id(0)
    f32 = jnp.float32
    bf16 = jnp.bfloat16

    @pl.when(ini_ref[s] != 0)
    def _init():
        acc_ref[...] = jnp.zeros_like(acc_ref)

    @pl.when(edg_ref[s] != 0)
    def _edge_block():
        lrelu = lambda v: jnp.where(v > 0, v, 0.1 * v)      # f32 elementwise (v5e-friendly)
        # Fused conv1 + W2(x_src): one MXU pass over the packed edge tensor.
        hw = jnp.dot(edge_ref[...].astype(bf16), wa_ref[...],
                     preferred_element_type=f32)             # [TILE_E, H1_P + DP]
        h1 = lrelu(hw[:, :h1_p])
        w2p = hw[:, h1_p:]
        h2 = lrelu(jnp.dot(h1.astype(bf16), m2_ref[...],
                           preferred_element_type=f32) + b2_ref[...])
        e_ij = jnp.dot(h2.astype(bf16), fcw_ref[...], preferred_element_type=f32)
        # numerically stable softplus gate (f32)
        gate = jnp.maximum(e_ij, 0.0) + jnp.log(1.0 + jnp.exp(-jnp.abs(e_ij)))
        msg = gate * w2p                                      # [TILE_E, DP]
        # Tile-local scatter-add via one-hot matmul (bf16 one-hot is exact, f32 accumulate).
        # Micro-opt: shift the small [1, TILE_E] dst row, not the [TILE_N, TILE_E] iota.
        tile_e = msg.shape[0]
        dst_local = dst_ref[...] - tid_ref[s] * tile_n
        row_ids = jax.lax.broadcasted_iota(jnp.int32, (tile_n, tile_e), 0)
        onehot = (dst_local == row_ids).astype(bf16)
        acc_ref[...] += jax.lax.dot_general(
            onehot, msg.astype(bf16), (((1,), (0,)), ((), ())),
            preferred_element_type=f32)

    @pl.when(fin_ref[s] != 0)
    def _finalize():
        # h = W1(x) + aggr (W1 bias via carrier lane), then relu(LayerNorm(h)).
        h = jnp.dot(x_ref[...].astype(bf16), w1w_ref[...],
                    preferred_element_type=f32) + acc_ref[...]
        # Padded lanes of h are exactly zero, so sum/out_dim gives LN stats over real lanes.
        inv_d = 1.0 / out_dim
        mean = jnp.sum(h, axis=-1, keepdims=True) * inv_d
        msq = jnp.sum(h * h, axis=-1, keepdims=True) * inv_d
        var = msq - mean * mean
        hn = (h - mean) * jax.lax.rsqrt(var + 1e-5) * gamma_ref[...] + beta_ref[...]
        out_ref[...] = jnp.maximum(hn, 0.0)


# -------------------------------- wrapper -------------------------------------

def single_gnn_layer_gated(x, edge_index, edge_attr, params, B, *, tile_n=128, tile_e=1024):
    x = jnp.asarray(x, jnp.float32)
    edge_attr = jnp.asarray(edge_attr, jnp.float32)
    src = np.asarray(edge_index[0]).astype(np.int64)
    dst = np.asarray(edge_index[1]).astype(np.int64)

    N, in_dim = int(x.shape[0]), int(x.shape[1])
    E = int(edge_attr.shape[0])
    out_dim = int(np.asarray(params["W1_w"]).shape[0])

    tile_n = _round_up(max(tile_n, 8), 8)
    tile_e = _round_up(max(tile_e, 128), 128)
    # Cap tile_e near the edge count (and ideally ~tile_n * avg_degree) to limit
    # node-tile-boundary straddle duplication and padding waste.
    tile_e = min(tile_e, _round_up(max(E, 1), 128))

    # Lane-dense padded dims (multiples of 128).
    EP = _round_up(2 * B + 1 + in_dim + 1, 128)    # packed edge lanes [ea | 1 | x_src | 1]
    H1_P = _round_up(8 * B, 128)                   # conv1 output lanes
    H2_P = _round_up(B + 1, 128)                   # conv2 output lanes (+ fc-bias carrier)
    DP = _round_up(out_dim, 128)                   # output lanes
    XP = _round_up(in_dim + 1, 128)                # node-feature lanes (+ W1-bias carrier)

    N_pad = _round_up(max(N, 1), tile_n)
    n_node_tiles = N_pad // tile_n
    E_pad = _round_up(max(E, 1), tile_e)

    # ----- per-graph host preprocessing (graph-structure only; cacheable across calls) -----
    order = np.argsort(dst, kind="stable")
    src_s = src[order]
    dst_s = dst[order]
    sentinel = np.int32(N_pad)                     # never matches a node-tile row

    dst_row = np.full((1, E_pad), sentinel, np.int32)
    dst_row[0, :E] = dst_s.astype(np.int32)

    # Flat work list over the real (node_tile, edge_block) pairs (CSR-style, dst-sorted).
    work_tid, work_ebk, work_ini, work_fin, work_edg = [], [], [], [], []
    prev_blk = 0
    for t in range(n_node_tiles):
        lo = int(np.searchsorted(dst_s, t * tile_n, side="left"))
        hi = int(np.searchsorted(dst_s, (t + 1) * tile_n, side="left"))
        if hi > lo:
            b0, b1 = lo // tile_e, (hi - 1) // tile_e
            for jj, b in enumerate(range(b0, b1 + 1)):
                work_tid.append(t); work_ebk.append(b); work_edg.append(1)
                work_ini.append(1 if jj == 0 else 0)
                work_fin.append(1 if b == b1 else 0)
            prev_blk = b1
        else:
            # node tile with no incoming edges: single init+finalize step, no edge work
            work_tid.append(t); work_ebk.append(prev_blk); work_edg.append(0)
            work_ini.append(1); work_fin.append(1)
    S = len(work_tid)
    tid_a = np.asarray(work_tid, np.int32)
    ebk_a = np.asarray(work_ebk, np.int32)
    ini_a = np.asarray(work_ini, np.int32)
    fin_a = np.asarray(work_fin, np.int32)
    edg_a = np.asarray(work_edg, np.int32)

    # ----- device-side feature packing (gather + carriers + pad) -----
    ord_j = jnp.asarray(order.astype(np.int32))
    srcs_j = jnp.asarray(src_s.astype(np.int32))
    onesE = jnp.ones((E, 1), jnp.float32)
    edge_pack = jnp.concatenate(
        [jnp.take(edge_attr, ord_j, axis=0), onesE,
         jnp.take(x, srcs_j, axis=0), onesE], axis=1)               # [E, 2B+in_dim+2]
    edge_pad = jnp.pad(edge_pack,
                       ((0, E_pad - E), (0, EP - (2 * B + in_dim + 2))))
    x_pack = jnp.concatenate([x, jnp.ones((N, 1), jnp.float32)], axis=1)
    x_pad = jnp.pad(x_pack, ((0, N_pad - N), (0, XP - (in_dim + 1))))

    # ----- parameter glue (per-model one-time cost): Toeplitz conv mats, folded biases -----
    p = {k: np.asarray(v, np.float32) for k, v in params.items()}
    # Block-diagonal fused weight: rows [0:2B]+bias-row -> conv1, rows [2B+1:...]+bias -> W2.
    wa = _conv1d_toeplitz(p["conv1_w"], B, EP, H1_P + DP)
    wa[2 * B, :8 * B] = np.repeat(p["conv1_b"], B)                  # conv1 bias row
    wa[2 * B + 1:2 * B + 1 + in_dim, H1_P:H1_P + out_dim] = p["W2_w"].T
    wa[2 * B + 1 + in_dim, H1_P:H1_P + out_dim] = p["W2_b"]         # W2 bias row
    m2 = _conv1d_toeplitz(p["conv2_w"], B, H1_P, H2_P)
    b2 = np.zeros((1, H2_P), np.float32)
    b2[0, :B] = np.repeat(p["conv2_b"], B)
    b2[0, H2_P - 1] = 1.0                                           # carrier -> fc bias row
    fcw = np.zeros((H2_P, DP), np.float32)
    fcw[:B, :out_dim] = p["fc_w"].T
    fcw[H2_P - 1, :out_dim] = p["fc_b"]                             # fc bias row
    w1w = np.zeros((XP, DP), np.float32)
    w1w[:in_dim, :out_dim] = p["W1_w"].T
    w1w[in_dim, :out_dim] = p["W1_b"]                               # W1 bias row
    gamma = np.zeros((1, DP), np.float32); gamma[0, :out_dim] = p["gamma"]
    beta = np.zeros((1, DP), np.float32);  beta[0, :out_dim] = p["beta"]

    # ----- specs (flat 1-D grid; scalar-prefetch refs appear positionally in index_maps) ----
    nmap = lambda s, tid, ebk, ini, fin, edg: (tid[s], 0)
    emap = lambda s, tid, ebk, ini, fin, edg: (ebk[s], 0)
    dmap = lambda s, tid, ebk, ini, fin, edg: (0, ebk[s])
    rmap = lambda s, tid, ebk, ini, fin, edg: (0, 0)
    in_specs = [
        pl.BlockSpec((tile_n, XP), nmap),        # x (+ carrier)
        pl.BlockSpec((tile_e, EP), emap),        # packed edge tensor
        pl.BlockSpec((1, tile_e), dmap),         # dst row
        pl.BlockSpec((EP, H1_P + DP), rmap),     # wa (conv1 ⊕ W2)
        pl.BlockSpec((H1_P, H2_P), rmap),        # m2
        pl.BlockSpec((1, H2_P), rmap),           # b2
        pl.BlockSpec((H2_P, DP), rmap),          # fcw
        pl.BlockSpec((XP, DP), rmap),            # w1w
        pl.BlockSpec((1, DP), rmap),             # gamma
        pl.BlockSpec((1, DP), rmap),             # beta
    ]
    out_spec = pl.BlockSpec((tile_n, DP), nmap)

    # ----- VMEM budget (actual footprint, generous headroom) & advisory cost estimate -----
    n_edge_steps = int(edg_a.sum())
    weight_bytes = (2 * (EP * (H1_P + DP) + H1_P * H2_P + H2_P * DP + XP * DP)
                    + 4 * (H2_P + 2 * DP))
    stream_bytes = 2 * 4 * (tile_e * EP + tile_e + tile_n * XP + tile_n * DP)  # dbl-buffered
    interm_bytes = 6 * 4 * tile_e * (H1_P + DP)                                 # f32 temps
    vmem_limit = int(min(48 << 20,
                         max(16 << 20,
                             2 * (2 * weight_bytes + stream_bytes
                                  + 4 * tile_n * DP + interm_bytes))))
    flops = int(n_edge_steps * (2 * tile_e * (EP * (H1_P + DP) + H1_P * H2_P + H2_P * DP)
                                + 2 * tile_n * tile_e * DP)
                + 2 * N_pad * XP * DP)
    bytes_accessed = int(4 * (n_edge_steps * tile_e * (EP + 1) + N_pad * (XP + DP))
                         + weight_bytes)
    transcendentals = int(n_edge_steps * 2 * tile_e * DP + N_pad)

    bf16 = jnp.bfloat16
    out_full = pl.pallas_call(
        functools.partial(gated_gnn_kernel, H1_P, out_dim, tile_n),
        out_shape=jax.ShapeDtypeStruct((N_pad, DP), jnp.float32),
        grid_spec=pltpu.PrefetchScalarGridSpec(
            num_scalar_prefetch=5,
            grid=(S,),
            in_specs=in_specs,
            out_specs=out_spec,
            scratch_shapes=[pltpu.VMEM((tile_n, DP), jnp.float32)],
        ),
        compiler_params=pltpu.CompilerParams(
            dimension_semantics=("arbitrary",),
            vmem_limit_bytes=vmem_limit,
        ),
        cost_estimate=pl.CostEstimate(
            flops=flops, transcendentals=transcendentals,
            bytes_accessed=bytes_accessed),
    )(
        jnp.asarray(tid_a), jnp.asarray(ebk_a), jnp.asarray(ini_a),
        jnp.asarray(fin_a), jnp.asarray(edg_a),
        x_pad, edge_pad, jnp.asarray(dst_row),
        jnp.asarray(wa, dtype=bf16), jnp.asarray(m2, dtype=bf16),
        jnp.asarray(b2), jnp.asarray(fcw, dtype=bf16), jnp.asarray(w1w, dtype=bf16),
        jnp.asarray(gamma), jnp.asarray(beta),
    )
    return out_full[:N, :out_dim]


# --------------------------- pure-JAX reference --------------------------------

def reference(x, edge_index, edge_attr, params, B):
    N = x.shape[0]
    src, dst = edge_index[0], edge_index[1]
    lrelu = lambda v: jnp.where(v > 0, v, 0.1 * v)
    dn = ("NCH", "OIH", "NCH")
    ea = edge_attr.reshape(-1, 2, B)
    h1 = jax.lax.conv_general_dilated(ea, params["conv1_w"], (1,), "SAME",
                                      dimension_numbers=dn)
    h1 = lrelu(h1 + params["conv1_b"][None, :, None])
    h2 = jax.lax.conv_general_dilated(h1, params["conv2_w"], (1,), "SAME",
                                      dimension_numbers=dn)
    h2 = lrelu(h2 + params["conv2_b"][None, :, None])[:, 0, :]
    e_ij = h2 @ params["fc_w"].T + params["fc_b"]
    gate = jax.nn.softplus(e_ij)
    w2pj = x[src] @ params["W2_w"].T + params["W2_b"]
    msg = gate * w2pj
    aggr = jnp.zeros((N, msg.shape[1]), msg.dtype).at[dst].add(msg)
    h = x @ params["W1_w"].T + params["W1_b"] + aggr
    mean = h.mean(-1, keepdims=True)
    var = ((h - mean) ** 2).mean(-1, keepdims=True)
    hn = (h - mean) / jnp.sqrt(var + 1e-5) * params["gamma"] + params["beta"]
    return jnp.maximum(hn, 0.0)


# ------------------------------------ main --------------------------------------

if __name__ == "__main__":
    B = 16          # edge_attr has 2*B features per edge
    in_dim = 8
    out_dim = 8
    N = 8           # nodes
    E = 16          # edges

    key = jax.random.PRNGKey(0)
    ks = jax.random.split(key, 12)

    x = jax.random.normal(ks[0], (N, in_dim), jnp.float32)
    edge_attr = jax.random.normal(ks[1], (E, 2 * B), jnp.float32)
    src = jax.random.randint(ks[2], (E,), 0, N, jnp.int32)
    dst = jax.random.randint(ks[3], (E,), 0, N, jnp.int32)
    edge_index = jnp.stack([src, dst], axis=0)

    params = {
        # GatedConvEdgeNet: Conv1d(2,8,3,pad=1), Conv1d(8,1,3,pad=1), Linear(B,out_dim)
        "conv1_w": 0.3 * jax.random.normal(ks[4], (8, 2, 3), jnp.float32),
        "conv1_b": jnp.zeros((8,), jnp.float32),       # init.zeros_ in the module
        "conv2_w": 0.3 * jax.random.normal(ks[5], (1, 8, 3), jnp.float32),
        "conv2_b": jnp.zeros((1,), jnp.float32),
        "fc_w": 0.3 * jax.random.normal(ks[6], (out_dim, B), jnp.float32),
        "fc_b": 0.1 * jax.random.normal(ks[7], (out_dim,), jnp.float32),
        # GatedGCNLayer linears W1, W2: Linear(in_dim, out_dim)
        "W1_w": 0.3 * jax.random.normal(ks[8], (out_dim, in_dim), jnp.float32),
        "W1_b": 0.1 * jax.random.normal(ks[9], (out_dim,), jnp.float32),
        "W2_w": 0.3 * jax.random.normal(ks[10], (out_dim, in_dim), jnp.float32),
        "W2_b": 0.1 * jax.random.normal(ks[11], (out_dim,), jnp.float32),
        # LayerNorm(out_dim)
        "gamma": jnp.ones((out_dim,), jnp.float32),
        "beta": jnp.zeros((out_dim,), jnp.float32),
    }
    # Make example weights exactly bf16-representable so the bf16-MXU kernel is directly
    # comparable to the f32 reference (only activation quantization error remains).
    params = jax.tree_util.tree_map(
        lambda a: a.astype(jnp.bfloat16).astype(jnp.float32), params)

    out = single_gnn_layer_gated(x, edge_index, edge_attr, params, B)
    out = jax.block_until_ready(out)

    ref = jax.block_until_ready(reference(x, edge_index, edge_attr, params, B))
    # bf16 MXU operands (f32 accumulation) in the kernel vs f32 reference -> relaxed tolerance.
    np.testing.assert_allclose(np.asarray(out), np.asarray(ref), rtol=5e-2, atol=5e-2)

    print("KERNEL_OK")
</pallas_src>

<mosaic_0001>
module attributes {stable_mosaic.version = 11 : i64} {
  func.func @gated_gnn_kernel(%arg0: i32, %arg1: memref<1xi32, #tpu.memory_space<smem>>, %arg2: memref<1xi32, #tpu.memory_space<smem>>, %arg3: memref<1xi32, #tpu.memory_space<smem>>, %arg4: memref<1xi32, #tpu.memory_space<smem>>, %arg5: memref<1xi32, #tpu.memory_space<smem>>, %arg6: memref<128x128xf32, #tpu.memory_space<vmem>>, %arg7: memref<128x128xf32, #tpu.memory_space<vmem>>, %arg8: memref<1x128xi32, #tpu.memory_space<vmem>>, %arg9: memref<128x256xbf16, #tpu.memory_space<vmem>>, %arg10: memref<128x128xbf16, #tpu.memory_space<vmem>>, %arg11: memref<1x128xf32, #tpu.memory_space<vmem>>, %arg12: memref<128x128xbf16, #tpu.memory_space<vmem>>, %arg13: memref<128x128xbf16, #tpu.memory_space<vmem>>, %arg14: memref<1x128xf32, #tpu.memory_space<vmem>>, %arg15: memref<1x128xf32, #tpu.memory_space<vmem>>, %arg16: memref<128x128xf32, #tpu.memory_space<vmem>>, %arg17: memref<128x128xf32, #tpu.memory_space<vmem>>) attributes {dimension_semantics = [#tpu.dimension_semantics<arbitrary>], iteration_bounds = array<i64: 1>, scalar_prefetch = 5 : i64, scratch_operands = 1 : i64, tpu.core_type = #tpu.core_type<tc>, window_params = [{transform_indices = @transform_0, window_bounds = array<i64: 128, 128>}, {transform_indices = @transform_1, window_bounds = array<i64: 128, 128>}, {transform_indices = @transform_2, window_bounds = array<i64: 1, 128>}, {pipeline_mode = #tpu.pipeline_mode<synchronous>, transform_indices = @transform_3, window_bounds = array<i64: 128, 256>}, {pipeline_mode = #tpu.pipeline_mode<synchronous>, transform_indices = @transform_4, window_bounds = array<i64: 128, 128>}, {pipeline_mode = #tpu.pipeline_mode<synchronous>, transform_indices = @transform_5, window_bounds = array<i64: 1, 128>}, {pipeline_mode = #tpu.pipeline_mode<synchronous>, transform_indices = @transform_6, window_bounds = array<i64: 128, 128>}, {pipeline_mode = #tpu.pipeline_mode<synchronous>, transform_indices = @transform_7, window_bounds = array<i64: 128, 128>}, {pipeline_mode = #tpu.pipeline_mode<synchronous>, transform_indices = @transform_8, window_bounds = array<i64: 1, 128>}, {pipeline_mode = #tpu.pipeline_mode<synchronous>, transform_indices = @transform_9, window_bounds = array<i64: 1, 128>}, {transform_indices = @transform_10, window_bounds = array<i64: 128, 128>}]} {
    %0 = arith.index_cast %arg0 : i32 to index
    %1 = memref.load %arg3[%0] : memref<1xi32, #tpu.memory_space<smem>>
    %c0_i32 = arith.constant 0 : i32
    %2 = arith.cmpi ne, %1, %c0_i32 : i32
    %3 = arith.extui %2 : i1 to i32
    %c0_i32_0 = arith.constant 0 : i32
    %4 = arith.cmpi ne, %3, %c0_i32_0 : i32
    scf.if %4 {
      %cst = arith.constant 0.000000e+00 : f32
      %15 = vector.broadcast %cst : f32 to vector<128x128xf32>
      %c0 = arith.constant 0 : index
      %c0_5 = arith.constant 0 : index
      %16 = vector.load %arg17[%c0, %c0_5] : memref<128x128xf32, #tpu.memory_space<vmem>>, vector<128x128xf32>
      tpu.vector_store %arg17[%c0, %c0_5], %15 {strides = array<i32>} : memref<128x128xf32, #tpu.memory_space<vmem>>, vector<128x128xf32>,
    } else {
    }
    %5 = arith.index_cast %arg0 : i32 to index
    %6 = memref.load %arg5[%5] : memref<1xi32, #tpu.memory_space<smem>>
    %c0_i32_1 = arith.constant 0 : i32
    %7 = arith.cmpi ne, %6, %c0_i32_1 : i32
    %8 = arith.extui %7 : i1 to i32
    %c0_i32_2 = arith.constant 0 : i32
    %9 = arith.cmpi ne, %8, %c0_i32_2 : i32
    scf.if %9 {
      %c0 = arith.constant 0 : index
      %c0_5 = arith.constant 0 : index
      %15 = vector.load %arg7[%c0, %c0_5] : memref<128x128xf32, #tpu.memory_space<vmem>>, vector<128x128xf32>
      %16 = arith.truncf %15 : vector<128x128xf32> to vector<128x128xbf16>
      %c0_6 = arith.constant 0 : index
      %c0_7 = arith.constant 0 : index
      %17 = vector.load %arg9[%c0_6, %c0_7] : memref<128x256xbf16, #tpu.memory_space<vmem>>, vector<128x256xbf16>
      %cst = arith.constant dense<0.000000e+00> : vector<128x256xf32>
      %18 = tpu.matmul %16, %17, %cst {dimension_numbers = #tpu.dot_dimension_numbers<[1], [0], [0], [1], [0, 0, 1, 1], [], []>} : vector<128x128xbf16>, vector<128x256xbf16>, vector<128x256xf32> -> vector<128x256xf32>
      %19 = vector.extract_strided_slice %18 {offsets = [0, 0], sizes = [128, 128], strides = [1, 1]} : vector<128x256xf32> to vector<128x128xf32>
      %cst_8 = arith.constant 0.000000e+00 : f32
      %20 = vector.broadcast %cst_8 : f32 to vector<128x128xf32>
      %21 = arith.cmpf ogt, %19, %20 : vector<128x128xf32>
      %cst_9 = arith.constant 1.000000e-01 : f32
      %22 = vector.broadcast %cst_9 : f32 to vector<128x128xf32>
      %23 = arith.mulf %22, %19 : vector<128x128xf32>
      %24 = arith.select %21, %19, %23 : vector<128x128xi1>, vector<128x128xf32>
      %25 = vector.extract_strided_slice %18 {offsets = [0, 128], sizes = [128, 128], strides = [1, 1]} : vector<128x256xf32> to vector<128x128xf32>
      %26 = arith.truncf %24 : vector<128x128xf32> to vector<128x128xbf16>
      %c0_10 = arith.constant 0 : index
      %c0_11 = arith.constant 0 : index
      %27 = vector.load %arg10[%c0_10, %c0_11] : memref<128x128xbf16, #tpu.memory_space<vmem>>, vector<128x128xbf16>
      %cst_12 = arith.constant dense<0.000000e+00> : vector<128x128xf32>
      %28 = tpu.matmul %26, %27, %cst_12 {dimension_numbers = #tpu.dot_dimension_numbers<[1], [0], [0], [1], [0, 0, 1, 1], [], []>} : vector<128x128xbf16>, vector<128x128xbf16>, vector<128x128xf32> -> vector<128x128xf32>
      %c0_13 = arith.constant 0 : index
      %c0_14 = arith.constant 0 : index
      %29 = vector.load %arg11[%c0_13, %c0_14] : memref<1x128xf32, #tpu.memory_space<vmem>>, vector<1x128xf32>
      %30 = vector.broadcast %29 : vector<1x128xf32> to vector<128x128xf32>
      %31 = arith.addf %28, %30 : vector<128x128xf32>
      %cst_15 = arith.constant 0.000000e+00 : f32
      %32 = vector.broadcast %cst_15 : f32 to vector<128x128xf32>
      %33 = arith.cmpf ogt, %31, %32 : vector<128x128xf32>
      %cst_16 = arith.constant 1.000000e-01 : f32
      %34 = vector.broadcast %cst_16 : f32 to vector<128x128xf32>
      %35 = arith.mulf %34, %31 : vector<128x128xf32>
      %36 = arith.select %33, %31, %35 : vector<128x128xi1>, vector<128x128xf32>
      %37 = arith.truncf %36 : vector<128x128xf32> to vector<128x128xbf16>
      %c0_17 = arith.constant 0 : index
      %c0_18 = arith.constant 0 : index
      %38 = vector.load %arg12[%c0_17, %c0_18] : memref<128x128xbf16, #tpu.memory_space<vmem>>, vector<128x128xbf16>
      %cst_19 = arith.constant dense<0.000000e+00> : vector<128x128xf32>
      %39 = tpu.matmul %37, %38, %cst_19 {dimension_numbers = #tpu.dot_dimension_numbers<[1], [0], [0], [1], [0, 0, 1, 1], [], []>} : vector<128x128xbf16>, vector<128x128xbf16>, vector<128x128xf32> -> vector<128x128xf32>
      %cst_20 = arith.constant 0.000000e+00 : f32
      %40 = vector.broadcast %cst_20 : f32 to vector<128x128xf32>
      %41 = arith.maximumf %39, %40 : vector<128x128xf32>
      %42 = math.absf %39 : vector<128x128xf32>
      %cst_21 = arith.constant 0.000000e+00 : f32
      %43 = vector.broadcast %cst_21 : f32 to vector<128x128xf32>
      %44 = arith.subf %43, %42 : vector<128x128xf32>
      %45 = math.exp %44 : vector<128x128xf32>
      %cst_22 = arith.constant 1.000000e+00 : f32
      %46 = vector.broadcast %cst_22 : f32 to vector<128x128xf32>
      %47 = arith.addf %46, %45 : vector<128x128xf32>
      %48 = math.log %47 : vector<128x128xf32>
      %49 = arith.addf %41, %48 : vector<128x128xf32>
      %50 = arith.mulf %49, %25 : vector<128x128xf32>
      %c0_23 = arith.constant 0 : index
      %c0_24 = arith.constant 0 : index
      %51 = vector.load %arg8[%c0_23, %c0_24] : memref<1x128xi32, #tpu.memory_space<vmem>>, vector<1x128xi32>
      %52 = arith.index_cast %arg0 : i32 to index
      %53 = memref.load %arg1[%52] : memref<1xi32, #tpu.memory_space<smem>>
      %c128_i32 = arith.constant 128 : i32
      %54 = arith.muli %53, %c128_i32 : i32
      %55 = vector.broadcast %54 : i32 to vector<1x128xi32>
      %56 = arith.subi %51, %55 : vector<1x128xi32>
      %57 = tpu.iota {dimensions = array<i32: 0>} : vector<128x128xi32>
      %58 = vector.broadcast %56 : vector<1x128xi32> to vector<128x128xi32>
      %59 = arith.cmpi eq, %58, %57 : vector<128x128xi32>
      %60 = arith.extui %59 : vector<128x128xi1> to vector<128x128xi32>
      %61 = arith.sitofp %60 : vector<128x128xi32> to vector<128x128xf32>
      %62 = arith.truncf %61 : vector<128x128xf32> to vector<128x128xbf16>
      %c0_25 = arith.constant 0 : index
      %c0_26 = arith.constant 0 : index
      %63 = vector.load %arg17[%c0_25, %c0_26] : memref<128x128xf32, #tpu.memory_space<vmem>>, vector<128x128xf32>
      %64 = arith.truncf %50 : vector<128x128xf32> to vector<128x128xbf16>
      %cst_27 = arith.constant dense<0.000000e+00> : vector<128x128xf32>
      %65 = tpu.matmul %62, %64, %cst_27 {dimension_numbers = #tpu.dot_dimension_numbers<[1], [0], [0], [1], [0, 0, 1, 1], [], []>} : vector<128x128xbf16>, vector<128x128xbf16>, vector<128x128xf32> -> vector<128x128xf32>
      %66 = arith.addf %63, %65 : vector<128x128xf32>
      %c0_28 = arith.constant 0 : index
      %c0_29 = arith.constant 0 : index
      %67 = vector.load %arg17[%c0_28, %c0_29] : memref<128x128xf32, #tpu.memory_space<vmem>>, vector<128x128xf32>
      tpu.vector_store %arg17[%c0_28, %c0_29], %66 {strides = array<i32>} : memref<128x128xf32, #tpu.memory_space<vmem>>, vector<128x128xf32>,
    } else {
    }
    %10 = arith.index_cast %arg0 : i32 to index
    %11 = memref.load %arg4[%10] : memref<1xi32, #tpu.memory_space<smem>>
    %c0_i32_3 = arith.constant 0 : i32
    %12 = arith.cmpi ne, %11, %c0_i32_3 : i32
    %13 = arith.extui %12 : i1 to i32
    %c0_i32_4 = arith.constant 0 : i32
    %14 = arith.cmpi ne, %13, %c0_i32_4 : i32
    scf.if %14 {
      %c0 = arith.constant 0 : index
      %c0_5 = arith.constant 0 : index
      %15 = vector.load %arg6[%c0, %c0_5] : memref<128x128xf32, #tpu.memory_space<vmem>>, vector<128x128xf32>
      %16 = arith.truncf %15 : vector<128x128xf32> to vector<128x128xbf16>
      %c0_6 = arith.constant 0 : index
      %c0_7 = arith.constant 0 : index
      %17 = vector.load %arg13[%c0_6, %c0_7] : memref<128x128xbf16, #tpu.memory_space<vmem>>, vector<128x128xbf16>
      %cst = arith.constant dense<0.000000e+00> : vector<128x128xf32>
      %18 = tpu.matmul %16, %17, %cst {dimension_numbers = #tpu.dot_dimension_numbers<[1], [0], [0], [1], [0, 0, 1, 1], [], []>} : vector<128x128xbf16>, vector<128x128xbf16>, vector<128x128xf32> -> vector<128x128xf32>
      %c0_8 = arith.constant 0 : index
      %c0_9 = arith.constant 0 : index
      %19 = vector.load %arg17[%c0_8, %c0_9] : memref<128x128xf32, #tpu.memory_space<vmem>>, vector<128x128xf32>
      %20 = arith.addf %18, %19 : vector<128x128xf32>
      %cst_10 = arith.constant dense<0.000000e+00> : vector<128xf32>
      %21 = vector.multi_reduction <add>, %20, %cst_10 [1] : vector<128x128xf32> to vector<128xf32>
      %22 = vector.shape_cast %21 : vector<128xf32> to vector<128x1xf32>
      %cst_11 = arith.constant 1.250000e-01 : f32
      %23 = vector.broadcast %cst_11 : f32 to vector<128x1xf32>
      %24 = arith.mulf %22, %23 : vector<128x1xf32>
      %25 = arith.mulf %20, %20 : vector<128x128xf32>
      %cst_12 = arith.constant dense<0.000000e+00> : vector<128xf32>
      %26 = vector.multi_reduction <add>, %25, %cst_12 [1] : vector<128x128xf32> to vector<128xf32>
      %27 = vector.shape_cast %26 : vector<128xf32> to vector<128x1xf32>
      %cst_13 = arith.constant 1.250000e-01 : f32
      %28 = vector.broadcast %cst_13 : f32 to vector<128x1xf32>
      %29 = arith.mulf %27, %28 : vector<128x1xf32>
      %30 = arith.mulf %24, %24 : vector<128x1xf32>
      %31 = arith.subf %29, %30 : vector<128x1xf32>
      %32 = vector.broadcast %24 : vector<128x1xf32> to vector<128x128xf32>
      %33 = arith.subf %20, %32 : vector<128x128xf32>
      %cst_14 = arith.constant 9.99999974E-6 : f32
      %34 = vector.broadcast %cst_14 : f32 to vector<128x1xf32>
      %35 = arith.addf %31, %34 : vector<128x1xf32>
      %36 = math.rsqrt %35 : vector<128x1xf32>
      %37 = vector.broadcast %36 : vector<128x1xf32> to vector<128x128xf32>
      %38 = arith.mulf %33, %37 : vector<128x128xf32>
      %c0_15 = arith.constant 0 : index
      %c0_16 = arith.constant 0 : index
      %39 = vector.load %arg14[%c0_15, %c0_16] : memref<1x128xf32, #tpu.memory_space<vmem>>, vector<1x128xf32>
      %40 = vector.broadcast %39 : vector<1x128xf32> to vector<128x128xf32>
      %41 = arith.mulf %38, %40 : vector<128x128xf32>
      %c0_17 = arith.constant 0 : index
      %c0_18 = arith.constant 0 : index
      %42 = vector.load %arg15[%c0_17, %c0_18] : memref<1x128xf32, #tpu.memory_space<vmem>>, vector<1x128xf32>
      %43 = vector.broadcast %42 : vector<1x128xf32> to vector<128x128xf32>
      %44 = arith.addf %41, %43 : vector<128x128xf32>
      %cst_19 = arith.constant 0.000000e+00 : f32
      %45 = vector.broadcast %cst_19 : f32 to vector<128x128xf32>
      %46 = arith.maximumf %44, %45 : vector<128x128xf32>
      %c0_20 = arith.constant 0 : index
      %c0_21 = arith.constant 0 : index
      %47 = vector.load %arg16[%c0_20, %c0_21] : memref<128x128xf32, #tpu.memory_space<vmem>>, vector<128x128xf32>
      tpu.vector_store %arg16[%c0_20, %c0_21], %46 {strides = array<i32>} : memref<128x128xf32, #tpu.memory_space<vmem>>, vector<128x128xf32>,
    } else {
    }
    return
  }
  func.func @transform_0(%arg0: i32, %arg1: memref<1xi32, #tpu.memory_space<smem>>, %arg2: memref<1xi32, #tpu.memory_space<smem>>, %arg3: memref<1xi32, #tpu.memory_space<smem>>, %arg4: memref<1xi32, #tpu.memory_space<smem>>, %arg5: memref<1xi32, #tpu.memory_space<smem>>) -> (i32, i32) {
    %0 = arith.index_cast %arg0 : i32 to index
    %1 = memref.load %arg1[%0] : memref<1xi32, #tpu.memory_space<smem>>
    %c0_i32 = arith.constant 0 : i32
    %c0_i32_0 = arith.constant 0 : i32
    return %1, %c0_i32 : i32, i32
  }
  func.func @transform_1(%arg0: i32, %arg1: memref<1xi32, #tpu.memory_space<smem>>, %arg2: memref<1xi32, #tpu.memory_space<smem>>, %arg3: memref<1xi32, #tpu.memory_space<smem>>, %arg4: memref<1xi32, #tpu.memory_space<smem>>, %arg5: memref<1xi32, #tpu.memory_space<smem>>) -> (i32, i32) {
    %0 = arith.index_cast %arg0 : i32 to index
    %1 = memref.load %arg2[%0] : memref<1xi32, #tpu.memory_space<smem>>
    %c0_i32 = arith.constant 0 : i32
    %c0_i32_0 = arith.constant 0 : i32
    return %1, %c0_i32 : i32, i32
  }
  func.func @transform_2(%arg0: i32, %arg1: memref<1xi32, #tpu.memory_space<smem>>, %arg2: memref<1xi32, #tpu.memory_space<smem>>, %arg3: memref<1xi32, #tpu.memory_space<smem>>, %arg4: memref<1xi32, #tpu.memory_space<smem>>, %arg5: memref<1xi32, #tpu.memory_space<smem>>) -> (i32, i32) {
    %0 = arith.index_cast %arg0 : i32 to index
    %1 = memref.load %arg2[%0] : memref<1xi32, #tpu.memory_space<smem>>
    %c0_i32 = arith.constant 0 : i32
    %c0_i32_0 = arith.constant 0 : i32
    return %c0_i32, %1 : i32, i32
  }
  func.func @transform_3(%arg0: i32, %arg1: memref<1xi32, #tpu.memory_space<smem>>, %arg2: memref<1xi32, #tpu.memory_space<smem>>, %arg3: memref<1xi32, #tpu.memory_space<smem>>, %arg4: memref<1xi32, #tpu.memory_space<smem>>, %arg5: memref<1xi32, #tpu.memory_space<smem>>) -> (i32, i32) {
    %c0_i32 = arith.constant 0 : i32
    %c0_i32_0 = arith.constant 0 : i32
    %c0_i32_1 = arith.constant 0 : i32
    return %c0_i32, %c0_i32_0 : i32, i32
  }
  func.func @transform_4(%arg0: i32, %arg1: memref<1xi32, #tpu.memory_space<smem>>, %arg2: memref<1xi32, #tpu.memory_space<smem>>, %arg3: memref<1xi32, #tpu.memory_space<smem>>, %arg4: memref<1xi32, #tpu.memory_space<smem>>, %arg5: memref<1xi32, #tpu.memory_space<smem>>) -> (i32, i32) {
    %c0_i32 = arith.constant 0 : i32
    %c0_i32_0 = arith.constant 0 : i32
    %c0_i32_1 = arith.constant 0 : i32
    return %c0_i32, %c0_i32_0 : i32, i32
  }
  func.func @transform_5(%arg0: i32, %arg1: memref<1xi32, #tpu.memory_space<smem>>, %arg2: memref<1xi32, #tpu.memory_space<smem>>, %arg3: memref<1xi32, #tpu.memory_space<smem>>, %arg4: memref<1xi32, #tpu.memory_space<smem>>, %arg5: memref<1xi32, #tpu.memory_space<smem>>) -> (i32, i32) {
    %c0_i32 = arith.constant 0 : i32
    %c0_i32_0 = arith.constant 0 : i32
    %c0_i32_1 = arith.constant 0 : i32
    return %c0_i32, %c0_i32_0 : i32, i32
  }
  func.func @transform_6(%arg0: i32, %arg1: memref<1xi32, #tpu.memory_space<smem>>, %arg2: memref<1xi32, #tpu.memory_space<smem>>, %arg3: memref<1xi32, #tpu.memory_space<smem>>, %arg4: memref<1xi32, #tpu.memory_space<smem>>, %arg5: memref<1xi32, #tpu.memory_space<smem>>) -> (i32, i32) {
    %c0_i32 = arith.constant 0 : i32
    %c0_i32_0 = arith.constant 0 : i32
    %c0_i32_1 = arith.constant 0 : i32
    return %c0_i32, %c0_i32_0 : i32, i32
  }
  func.func @transform_7(%arg0: i32, %arg1: memref<1xi32, #tpu.memory_space<smem>>, %arg2: memref<1xi32, #tpu.memory_space<smem>>, %arg3: memref<1xi32, #tpu.memory_space<smem>>, %arg4: memref<1xi32, #tpu.memory_space<smem>>, %arg5: memref<1xi32, #tpu.memory_space<smem>>) -> (i32, i32) {
    %c0_i32 = arith.constant 0 : i32
    %c0_i32_0 = arith.constant 0 : i32
    %c0_i32_1 = arith.constant 0 : i32
    return %c0_i32, %c0_i32_0 : i32, i32
  }
  func.func @transform_8(%arg0: i32, %arg1: memref<1xi32, #tpu.memory_space<smem>>, %arg2: memref<1xi32, #tpu.memory_space<smem>>, %arg3: memref<1xi32, #tpu.memory_space<smem>>, %arg4: memref<1xi32, #tpu.memory_space<smem>>, %arg5: memref<1xi32, #tpu.memory_space<smem>>) -> (i32, i32) {
    %c0_i32 = arith.constant 0 : i32
    %c0_i32_0 = arith.constant 0 : i32
    %c0_i32_1 = arith.constant 0 : i32
    return %c0_i32, %c0_i32_0 : i32, i32
  }
  func.func @transform_9(%arg0: i32, %arg1: memref<1xi32, #tpu.memory_space<smem>>, %arg2: memref<1xi32, #tpu.memory_space<smem>>, %arg3: memref<1xi32, #tpu.memory_space<smem>>, %arg4: memref<1xi32, #tpu.memory_space<smem>>, %arg5: memref<1xi32, #tpu.memory_space<smem>>) -> (i32, i32) {
    %c0_i32 = arith.constant 0 : i32
    %c0_i32_0 = arith.constant 0 : i32
    %c0_i32_1 = arith.constant 0 : i32
    return %c0_i32, %c0_i32_0 : i32, i32
  }
  func.func @transform_10(%arg0: i32, %arg1: memref<1xi32, #tpu.memory_space<smem>>, %arg2: memref<1xi32, #tpu.memory_space<smem>>, %arg3: memref<1xi32, #tpu.memory_space<smem>>, %arg4: memref<1xi32, #tpu.memory_space<smem>>, %arg5: memref<1xi32, #tpu.memory_space<smem>>) -> (i32, i32) {
    %0 = arith.index_cast %arg0 : i32 to index
    %1 = memref.load %arg1[%0] : memref<1xi32, #tpu.memory_space<smem>>
    %c0_i32 = arith.constant 0 : i32
    %c0_i32_0 = arith.constant 0 : i32
    return %1, %c0_i32 : i32, i32
  }
}

</mosaic_0001>

<bundles_post_ra>
// kernel: tpu_custom_call.1
= control target key start
LH: loop header
LB: loop body
LE: loop exit
PB: predicated region body
PF: predicated region fallthrough
CT: control target
= control target key end

     0   :  { %s3056_s0 = inlined_call_operand.<no memory space> [shape: s32[1], index: 0, kind: input, shape index: {}]   ;;  %s3057_s1 = inlined_call_operand.<no memory space> [shape: s32[1], index: 1, kind: input, shape index: {}]   ;;  %s3058_s2 = inlined_call_operand.<no memory space> [shape: s32[1], index: 2, kind: input, shape index: {}]   ;;  %s3059_s3 = inlined_call_operand.<no memory space> [shape: s32[1], index: 3, kind: input, shape index: {}]   ;;  %s3060_s4 = inlined_call_operand.<no memory space> [shape: s32[1], index: 4, kind: input, shape index: {}]   ;;  %s3061_s5 = inlined_call_operand.hbm [shape: f32[128,128], index: 5, kind: input, shape index: {}]   ;;  %s3062_s6 = inlined_call_operand.hbm [shape: f32[128,128], index: 6, kind: input, shape index: {}]   ;;  %s3063_s7 = inlined_call_operand.vmem [shape: s32[1,128], index: 7, kind: input, shape index: {}]   ;;  %s3064_s8 = inlined_call_operand.hbm [shape: bf16[128,256], index: 8, kind: input, shape index: {}]   ;;  %s3065_s9 = inlined_call_operand.hbm [shape: bf16[128,128], index: 9, kind: input, shape index: {}]   ;;  %s3066_s10 = inlined_call_operand.vmem [shape: f32[1,128], index: 10, kind: input, shape index: {}]   ;;  %s3067_s11 = inlined_call_operand.hbm [shape: bf16[128,128], index: 11, kind: input, shape index: {}]   ;;  %s3068_s12 = inlined_call_operand.hbm [shape: bf16[128,128], index: 12, kind: input, shape index: {}]   ;;  %s3069_s13 = inlined_call_operand.vmem [shape: f32[1,128], index: 13, kind: input, shape index: {}]   ;;  %s3070_s14 = inlined_call_operand.vmem [shape: f32[1,128], index: 14, kind: input, shape index: {}]   ;;  %s3071_s15 = inlined_call_operand.hbm [shape: f32[128,128], index: 15, kind: output, shape index: {}]  }
   0x1   :  { %20 = sst [smem:[#allocation4]] %s3056_s0 }
   0x2   :  { %23 = sst [smem:[#allocation7]] %s3059_s3 }
   0x3   :  { %24 = sst [smem:[#allocation8]] %s3060_s4 }
   0x4   :  { %25 = vsyncpa [#allocation10], 0 }
   0x5   :  { %26 = vsyncpa [#allocation13], 0 }
   0x6   :  { %27 = vsyncpa [#allocation16], 0 }
   0x7   :  { %28 = vsyncpa [#allocation19], 0 }
   0x8   :  { %29 = vsyncpa [#allocation11], 0  ;;  %s1863_s26 = sshll.u32 %s3057_s1, 11  ;;  %s2417_s29 = smov [#allocation12]  }
   0x9   :  { %s54_s0 = scalar_lea.hbm %s3062_s6, %s1863_s26  ;;  %s55_s30 = sshll.u32 %s2417_s29, 4  ;;  %s56_s30 = int_to_ptr.vmem [resolvable:$true] %s55_s30 }
   0xa   :  { %s2247_s3 = scalar_lea.hbm %s54_s0, 2048  ;;  %s2249_s17 = scalar_lea.hbm %s3062_s6, 2048 }
   0xb   :  { %p2248_p0 = scmp.ne.s32.totalorder %s54_s0, %s2247_s3  ;;  %p2250_p1 = scmp.lt.u32.totalorder %s54_s0, %s3062_s6 }
   0xc   :  { %p2251_p2 = scmp.lt.u32.totalorder %s2249_s17, %s2247_s3  ;;  %p2253_p4 = scmp.lt.u32.totalorder %s2247_s3, %s54_s0 }
   0xe   :  { %p2252_p3 = por %p2251_p2, %p2250_p1 }
  0x10   :  { %p2254_p5 = por %p2253_p4, %p2252_p3 }
  0x12   :  { %p2255_p6 = pnand %p2254_p5, %p2248_p0 }
  0x14   :  { %2258 = shalt.err (!%p2255_p6)
}
  0x15   :  { %s2259_s20 = scalar_lea.vmem %s56_s30, 2048  ;;  %p2264_p8 = scmp.lt.s32.totalorder %s56_s30, %s56_s30 }
  0x16   :  { %p2260_p7 = scmp.ne.s32.totalorder %s56_s30, %s2259_s20  ;;  %p2265_p9 = scmp.lt.s32.totalorder %s2259_s20, %s2259_s20 }
  0x18   :  { %p2266_p10 = por %p2265_p9, %p2264_p8 }
  0x1a   :  { %p2267_p11 = pnand %p2266_p10, %p2260_p7 }
  0x1c   :  { %2270 = shalt.err (!%p2267_p11)
}
  0x1d   :  { %s2418_s21 = smov 128   ;;  %s2419_s22 = smov 8  }
  0x1e   :  { %61 = dma.hbm_to_vmem [thread:$0]  %s54_s0, 2048, %s56_s30, [#allocation13], %s2418_s21, %s2418_s21, %s2419_s22  }
  0x1f   :  { %s2420_s6 = smov [#allocation15]   ;;  %s2271_s26 = scalar_lea.hbm %s3065_s9, 1024 }
  0x20   :  { %s86_s23 = sshll.u32 %s2420_s6, 4  ;;  %p2272_p12 = scmp.ne.s32.totalorder %s3065_s9, %s2271_s26  ;;  %s87_s23 = int_to_ptr.vmem [resolvable:$true] %s86_s23 }
  0x21   :  { %p2275_p13 = scmp.lt.u32.totalorder %s2271_s26, %s3065_s9 }
  0x23   :  { %p2277_p0 = pnand %p2275_p13, %p2272_p12 }
  0x25   :  { %2280 = shalt.err (!%p2277_p0)
}
  0x26   :  { %s2281_s16 = scalar_lea.vmem %s87_s23, 1024  ;;  %p2286_p2 = scmp.lt.s32.totalorder %s87_s23, %s87_s23 }
  0x27   :  { %p2282_p1 = scmp.ne.s32.totalorder %s87_s23, %s2281_s16  ;;  %p2287_p3 = scmp.lt.s32.totalorder %s2281_s16, %s2281_s16 }
  0x29   :  { %p2288_p4 = por %p2287_p3, %p2286_p2 }
  0x2b   :  { %p2289_p5 = pnand %p2288_p4, %p2282_p1 }
  0x2d   :  { %2292 = shalt.err (!%p2289_p5)
}
  0x2e   :  { %s3072_s0 = smov 64   ;;  %s2422_s30 = smov 4  }
  0x2f   :  { %92 = dma.hbm_to_vmem [thread:$0]  %s3065_s9, 1024, %s87_s23, [#allocation16], %s3072_s0, %s3072_s0, %s2422_s30  }
  0x30   :  { %s32_s18 = sld [smem:[#allocation4]]  ;;  %s2423_s19 = smov [#allocation9]  }
  0x31   :  { %s39_s20 = sshll.u32 %s2423_s19, 4  ;;  %s2424_s6 = smov [#allocation14]   ;;  %s2550_s20 = int_to_ptr.vmem [resolvable:$true] %s39_s20 }
  0x32   :  { %s74_s24 = sshll.u32 %s2424_s6, 4  ;;  %s2293_s27 = scalar_lea.hbm %s3064_s8, 2048  ;;  %s75_s24 = int_to_ptr.vmem [resolvable:$true] %s74_s24 }
  0x33   :  { %p2294_p6 = scmp.ne.s32.totalorder %s3064_s8, %s2293_s27  ;;  %p2297_p7 = scmp.lt.u32.totalorder %s2293_s27, %s3064_s8 }
  0x35   :  { %p2299_p8 = pnand %p2297_p7, %p2294_p6 }
  0x37   :  { %2302 = shalt.err (!%p2299_p8)
}
  0x38   :  { %s2303_s9 = scalar_lea.vmem %s75_s24, 2048  ;;  %p2308_p10 = scmp.lt.s32.totalorder %s75_s24, %s75_s24 }
  0x39   :  { %p2304_p9 = scmp.ne.s32.totalorder %s75_s24, %s2303_s9  ;;  %p2309_p11 = scmp.lt.s32.totalorder %s2303_s9, %s2303_s9 }
  0x3b   :  { %p2310_p12 = por %p2309_p11, %p2308_p10 }
  0x3d   :  { %p2311_p13 = pnand %p2310_p12, %p2304_p9 }
  0x3f   :  { %2314 = shalt.err (!%p2311_p13)
}
  0x40   :  { %80 = dma.hbm_to_vmem [thread:$0]  %s3064_s8, 2048, %s75_s24, [#allocation13], %s2418_s21, %s2418_s21, %s2419_s22  }
  0x41   :  { %s2425_s17 = smov [#allocation17]   ;;  %s1862_s6 = sshll.u32 %s32_s18, 11 }
  0x42   :  { %s100_s19 = sshll.u32 %s2425_s17, 4  ;;  %s38_s27 = scalar_lea.hbm %s3061_s5, %s1862_s6  ;;  %s2567_s19 = int_to_ptr.vmem [resolvable:$true] %s100_s19 }
  0x43   :  { %s2426_s28 = smov [#allocation18]   ;;  %s2315_s3 = scalar_lea.hbm %s38_s27, 2048 }
  0x44   :  { %s2572_s29 = sshll.u32 %s2426_s28, 4  ;;  %p2316_p0 = scmp.ne.s32.totalorder %s38_s27, %s2315_s3  ;;  %s113_s29 = int_to_ptr.vmem [resolvable:$true] %s2572_s29 }
  0x45   :  { %s2317_s0 = scalar_lea.hbm %s3061_s5, 2048  ;;  %p2318_p1 = scmp.lt.u32.totalorder %s38_s27, %s3061_s5 }
  0x46   :  { %p2319_p2 = scmp.lt.u32.totalorder %s2317_s0, %s2315_s3  ;;  %p2321_p4 = scmp.lt.u32.totalorder %s2315_s3, %s38_s27 }
  0x48   :  { %p2320_p3 = por %p2319_p2, %p2318_p1 }
  0x4a   :  { %p2322_p5 = por %p2321_p4, %p2320_p3 }
  0x4c   :  { %p2323_p6 = pnand %p2322_p5, %p2316_p0 }
  0x4e   :  { %2326 = shalt.err (!%p2323_p6)
}
  0x4f   :  { %s2327_s18 = scalar_lea.vmem %s2550_s20, 2048  ;;  %p2332_p8 = scmp.lt.s32.totalorder %s2550_s20, %s2550_s20 }
  0x50   :  { %p2328_p7 = scmp.ne.s32.totalorder %s2550_s20, %s2327_s18  ;;  %p2333_p9 = scmp.lt.s32.totalorder %s2327_s18, %s2327_s18 }
  0x52   :  { %p2334_p10 = por %p2333_p9, %p2332_p8 }
  0x54   :  { %p2335_p11 = pnand %p2334_p10, %p2328_p7 }
  0x56   :  { %2338 = shalt.err (!%p2335_p11)
}
  0x57   :  { %45 = dma.hbm_to_vmem [thread:$0]  %s38_s27, 2048, %s2550_s20, [#allocation10], %s2418_s21, %s2418_s21, %s2419_s22  }
  0x58   :  { %s2339_s24 = scalar_lea.hbm %s3067_s11, 1024 }
  0x59   :  { %p2340_p12 = scmp.ne.s32.totalorder %s3067_s11, %s2339_s24  ;;  %p2343_p13 = scmp.lt.u32.totalorder %s2339_s24, %s3067_s11 }
  0x5b   :  { %p2345_p0 = pnand %p2343_p13, %p2340_p12 }
  0x5d   :  { %2348 = shalt.err (!%p2345_p0)
}
  0x5e   :  { %s2349_s26 = scalar_lea.vmem %s2567_s19, 1024  ;;  %p2354_p2 = scmp.lt.s32.totalorder %s2567_s19, %s2567_s19 }
  0x5f   :  { %p2350_p1 = scmp.ne.s32.totalorder %s2567_s19, %s2349_s26  ;;  %p2355_p3 = scmp.lt.s32.totalorder %s2349_s26, %s2349_s26 }
  0x61   :  { %p2356_p4 = por %p2355_p3, %p2354_p2 }
  0x63   :  { %p2357_p5 = pnand %p2356_p4, %p2350_p1 }
  0x65   :  { %2360 = shalt.err (!%p2357_p5)
}
  0x66   :  { %s3074_s20 = smov 64   ;;  %s2361_s9 = scalar_lea.hbm %s3068_s12, 1024 }
  0x67   :  { %106 = dma.hbm_to_vmem [thread:$0]  %s3067_s11, 1024, %s2567_s19, [#allocation16], %s3074_s20, %s3074_s20, %s2422_s30  }
  0x68   :  { %p2362_p6 = scmp.ne.s32.totalorder %s3068_s12, %s2361_s9  ;;  %p2365_p7 = scmp.lt.u32.totalorder %s2361_s9, %s3068_s12 }
  0x6a   :  { %p2367_p8 = pnand %p2365_p7, %p2362_p6 }
  0x6c   :  { %2370 = shalt.err (!%p2367_p8)
}
  0x6d   :  { %s2371_s0 = scalar_lea.vmem %s113_s29, 1024  ;;  %p2376_p10 = scmp.lt.s32.totalorder %s113_s29, %s113_s29 }
  0x6e   :  { %p2372_p9 = scmp.ne.s32.totalorder %s113_s29, %s2371_s0  ;;  %p2377_p11 = scmp.lt.s32.totalorder %s2371_s0, %s2371_s0 }
  0x70   :  { %p2378_p12 = por %p2377_p11, %p2376_p10 }
  0x72   :  { %p2379_p13 = pnand %p2378_p12, %p2372_p9 }
  0x74   :  { %2382 = shalt.err (!%p2379_p13)
}
  0x75   :  { %118 = dma.hbm_to_vmem [thread:$0]  %s3068_s12, 1024, %s113_s29, [#allocation19], %s3074_s20, %s3074_s20, %s2422_s30  }
  0x76   :  { %2407 = dma.done.wait [#allocation10], 2048  }
  0x77   :  { %2408 = vsyncadd [#allocation10], 4294965248 }
  0x78   :  { %2409 = dma.done.wait [#allocation13], 4096  }
  0x79   :  { %2410 = vsyncadd [#allocation13], 4294963200 }
  0x7a   :  { %2411 = dma.done.wait [#allocation16], 2048  }
  0x7b   :  { %2412 = vsyncadd [#allocation16], 4294965248 }
  0x7c   :  { %2413 = dma.done.wait [#allocation19], 1024  }
  0x7d   :  { %2414 = vsyncadd [#allocation19], 4294966272  ;;  %p150_p0 = scmp.lt.s32.totalorder %s3057_s1, 0  ;;  %p1781_p1 = scmp.eq.s32.totalorder %s3058_s2, 0 }
  0x7e   :  { %v2427_v0 = vmov (!%p1781_p1), 0.0  }
  0x7f   :  { %s3088_s1 = smov (!%p150_p0, %s3057_s1), 0  ;;  %161 = sbr.rel (%p1781_p1) target bundleno = 136 (0x88), region = 69 }
  0x80   :  { %s152_s30 = scalar_lea.vmem %s3063_s7, %s3088_s1  ;;  %162 = vst [vmem:[#allocation2] sm:$0xff] (!%p1781_p1), %v2427_v0  ;;  %163 = vst [vmem:[#allocation2 + $0x8] sm:$0xff] (!%p1781_p1), %v2427_v0 }
  0x81   :  { %164 = vst [vmem:[#allocation2 + $0x10] sm:$0xff] (!%p1781_p1), %v2427_v0  ;;  %165 = vst [vmem:[#allocation2 + $0x18] sm:$0xff] (!%p1781_p1), %v2427_v0 }
  0x82   :  { %166 = vst [vmem:[#allocation2 + $0x20] sm:$0xff] (!%p1781_p1), %v2427_v0  ;;  %167 = vst [vmem:[#allocation2 + $0x28] sm:$0xff] (!%p1781_p1), %v2427_v0 }
  0x83   :  { %168 = vst [vmem:[#allocation2 + $0x30] sm:$0xff] (!%p1781_p1), %v2427_v0  ;;  %169 = vst [vmem:[#allocation2 + $0x38] sm:$0xff] (!%p1781_p1), %v2427_v0 }
  0x84   :  { %170 = vst [vmem:[#allocation2 + $0x40] sm:$0xff] (!%p1781_p1), %v2427_v0  ;;  %171 = vst [vmem:[#allocation2 + $0x48] sm:$0xff] (!%p1781_p1), %v2427_v0 }
  0x85   :  { %172 = vst [vmem:[#allocation2 + $0x50] sm:$0xff] (!%p1781_p1), %v2427_v0  ;;  %173 = vst [vmem:[#allocation2 + $0x58] sm:$0xff] (!%p1781_p1), %v2427_v0 }
  0x86   :  { %174 = vst [vmem:[#allocation2 + $0x60] sm:$0xff] %v2427_v0  ;;  %175 = vst [vmem:[#allocation2 + $0x68] sm:$0xff] %v2427_v0 }
  0x87   :  { %176 = vst [vmem:[#allocation2 + $0x70] sm:$0xff] %v2427_v0  ;;  %177 = vst [vmem:[#allocation2 + $0x78] sm:$0xff] %v2427_v0 }
  0x88 PF:  { %s178_s2 = sld [smem:[#allocation8]] }
  0x8e   :  { %p1782_p2 = scmp.eq.s32.totalorder %s178_s2, 0 }
  0x8f   :  { %v2103_v1 = vld [vmem:[#allocation14 + $0x4] ss:$8 sps:$4 sm:$0xff] (!%p1782_p2)   ;;  %v2105_v2 = vld [vmem:[#allocation14] ss:$8 sps:$4 sm:$0xff] (!%p1782_p2)   ;;  %v2428_v3 = vmov (!%p1782_p2), 0   ;;  %v2129_v17 = vld [vmem:[#allocation15 + $0x10] sm:$0xff] (!%p1782_p2)  }
  0x90   :  { %182 = sbr.rel (%p1782_p2) target bundleno = 1164 (0x48c), region = 73  ;;  %335 = vmatprep.mubr.bf16.mxu0 (!%p1782_p2), %v2428_v3  ;;  %303 = vmatprep.subr.bf16.mxu0 (!%p1782_p2), %v2103_v1  ;;  %v2106_v4 = vld [vmem:[#allocation14 + $0x14] ss:$8 sps:$4 sm:$0xff] (!%p1782_p2)   ;;  %v2108_v5 = vld [vmem:[#allocation14 + $0x10] ss:$8 sps:$4 sm:$0xff] (!%p1782_p2)   ;;  %v2127_v13 = vld [vmem:[#allocation15] sm:$0xff] (!%p1782_p2)  }
  0x91   :  { %304 = vmatpush1.bf16.msra.mxu0 (!%p1782_p2), %v2105_v2  ;;  %v2109_v6 = vld [vmem:[#allocation14 + $0x24] ss:$8 sps:$4 sm:$0xff] (!%p1782_p2)   ;;  %v2111_v7 = vld [vmem:[#allocation14 + $0x20] ss:$8 sps:$4 sm:$0xff] (!%p1782_p2)   ;;  %v2112_v8 = vld [vmem:[#allocation14 + $0x34] ss:$8 sps:$4 sm:$0xff] (!%p1782_p2)   ;;  %1929 = vmatprep.subr.bf16.mxu1 (!%p1782_p2), %v2127_v13 }
  0x92   :  { %305 = vmatprep.subr.bf16.mxu0 (!%p1782_p2), %v2106_v4  ;;  %v2114_v9 = vld [vmem:[#allocation14 + $0x30] ss:$8 sps:$4 sm:$0xff] (!%p1782_p2)   ;;  %v2115_v10 = vld [vmem:[#allocation14 + $0x44] ss:$8 sps:$4 sm:$0xff] (!%p1782_p2)   ;;  %v2117_v11 = vld [vmem:[#allocation14 + $0x40] ss:$8 sps:$4 sm:$0xff] (!%p1782_p2)   ;;  %1930 = vmatpush3.bf16.msra.mxu1 (!%p1782_p2), %v2127_v13 }
  0x93   :  { %v2118_v12 = vld [vmem:[#allocation14 + $0x54] ss:$8 sps:$4 sm:$0xff] (!%p1782_p2)   ;;  %v2120_v14 = vld [vmem:[#allocation14 + $0x50] ss:$8 sps:$4 sm:$0xff] (!%p1782_p2)   ;;  %v2128_v15 = vld [vmem:[#allocation15 + $0x8] sm:$0xff] (!%p1782_p2)  }
  0x94   :  { %v2121_v16 = vld [vmem:[#allocation14 + $0x64] ss:$8 sps:$4 sm:$0xff] (!%p1782_p2)   ;;  %1931 = vmatprep.subr.bf16.mxu1 (!%p1782_p2), %v2128_v15  ;;  %v2123_v18 = vld [vmem:[#allocation14 + $0x60] ss:$8 sps:$4 sm:$0xff] (!%p1782_p2)   ;;  %v2124_v19 = vld [vmem:[#allocation14 + $0x74] ss:$8 sps:$4 sm:$0xff] (!%p1782_p2)  }
  0x95   :  { %306 = vmatpush1.bf16.msra.mxu0 (!%p1782_p2), %v2108_v5  ;;  %v2130_v20 = vld [vmem:[#allocation15 + $0x18] sm:$0xff] (!%p1782_p2)   ;;  %v183_v22 = vld [vmem:[#allocation12] sm:$0xff] (!%p1782_p2)  ;;  %v184_v23 = vld [vmem:[#allocation12 + $0x8] sm:$0xff] (!%p1782_p2) }
  0x96   :  { %307 = vmatprep.subr.bf16.mxu0 (!%p1782_p2), %v2109_v6  ;;  %1932 = vmatpush3.bf16.msra.mxu1 (!%p1782_p2), %v2128_v15  ;;  %v2126_v21 = vld [vmem:[#allocation14 + $0x70] ss:$8 sps:$4 sm:$0xff] (!%p1782_p2)   ;;  %v199_v24 = vpack.c.bf16 (!%p1782_p2), %v184_v23, %v183_v22  ;;  %v187_v28 = vld [vmem:[#allocation12 + $0x20] sm:$0xff] (!%p1782_p2)  ;;  %v188_v29 = vld [vmem:[#allocation12 + $0x28] sm:$0xff] (!%p1782_p2) }
  0x97   :  { %1933 = vmatprep.subr.bf16.mxu1 %v2129_v17  ;;  %v185_v25 = vld [vmem:[#allocation12 + $0x10] sm:$0xff]  ;;  %v186_v26 = vld [vmem:[#allocation12 + $0x18] sm:$0xff]  ;;  %v201_v30 = vpack.c.bf16 %v188_v29, %v187_v28  ;;  %v191_v34 = vld [vmem:[#allocation12 + $0x40] sm:$0xff] }
  0x98   :  { %v200_v27 = vpack.c.bf16 %v186_v26, %v185_v25  ;;  %v189_v31 = vld [vmem:[#allocation12 + $0x30] sm:$0xff]  ;;  %v190_v32 = vld [vmem:[#allocation12 + $0x38] sm:$0xff]  ;;  %v192_v35 = vld [vmem:[#allocation12 + $0x48] sm:$0xff] }
  0x99   :  { %308 = vmatpush1.bf16.msra.mxu0 %v2111_v7  ;;  %v202_v33 = vpack.c.bf16 %v190_v32, %v189_v31  ;;  %v203_v36 = vpack.c.bf16 %v192_v35, %v191_v34  ;;  %v193_v37 = vld [vmem:[#allocation12 + $0x50] sm:$0xff]  ;;  %v194_v38 = vld [vmem:[#allocation12 + $0x58] sm:$0xff]  ;;  %v195_v40 = vld [vmem:[#allocation12 + $0x60] sm:$0xff] }
  0x9a   :  { %309 = vmatprep.subr.bf16.mxu0 %v2112_v8  ;;  %1934 = vmatpush3.bf16.msra.mxu1 %v2129_v17  ;;  %v204_v39 = vpack.c.bf16 %v194_v38, %v193_v37  ;;  %v196_v41 = vld [vmem:[#allocation12 + $0x68] sm:$0xff]  ;;  %v197_v43 = vld [vmem:[#allocation12 + $0x70] sm:$0xff]  ;;  %v198_v44 = vld [vmem:[#allocation12 + $0x78] sm:$0xff] }
  0x9b   :  { %1935 = vmatprep.subr.bf16.mxu1 %v2130_v20  ;;  %v205_v42 = vpack.c.bf16 %v196_v41, %v195_v40  ;;  %v206_v45 = vpack.c.bf16 %v198_v44, %v197_v43  ;;  %v2131_v46 = vld [vmem:[#allocation15 + $0x20] sm:$0xff]   ;;  %v2132_v47 = vld [vmem:[#allocation15 + $0x28] sm:$0xff]   ;;  %v2133_v48 = vld [vmem:[#allocation15 + $0x30] sm:$0xff]  }
  0x9c   :  { %v2134_v49 = vld [vmem:[#allocation15 + $0x38] sm:$0xff]   ;;  %v2135_v50 = vld [vmem:[#allocation17] sm:$0xff]   ;;  %v2136_v5 = vld [vmem:[#allocation17 + $0x8] sm:$0xff]  }
  0x9d   :  { %310 = vmatpush1.bf16.msra.mxu0 %v2114_v9 }
  0x9e   :  { %311 = vmatprep.subr.bf16.mxu0 %v2115_v10  ;;  %1936 = vmatpush3.bf16.msra.mxu1 %v2130_v20  ;;  %v2137_v10 = vld [vmem:[#allocation17 + $0x10] sm:$0xff]  }
  0x9f   :  { %1937 = vmatprep.subr.bf16.mxu1 %v2131_v46 }
  0xa1   :  { %312 = vmatpush1.bf16.msra.mxu0 %v2117_v11 }
  0xa2   :  { %313 = vmatprep.subr.bf16.mxu0 %v2118_v12  ;;  %1938 = vmatpush3.bf16.msra.mxu1 %v2131_v46 }
  0xa3   :  { %1939 = vmatprep.subr.bf16.mxu1 %v2132_v47 }
  0xa5   :  { %314 = vmatpush1.bf16.msra.mxu0 %v2120_v14 }
  0xa6   :  { %315 = vmatprep.subr.bf16.mxu0 %v2121_v16  ;;  %1940 = vmatpush3.bf16.msra.mxu1 %v2132_v47  ;;  %v2138_v16 = vld [vmem:[#allocation17 + $0x18] sm:$0xff]  }
  0xa7   :  { %1941 = vmatprep.subr.bf16.mxu1 %v2133_v48 }
  0xa9   :  { %316 = vmatpush1.bf16.msra.mxu0 %v2123_v18 }
  0xaa   :  { %317 = vmatprep.subr.bf16.mxu0 %v2124_v19  ;;  %1942 = vmatpush3.bf16.msra.mxu1 %v2133_v48 }
  0xab   :  { %1943 = vmatprep.subr.bf16.mxu1 %v2134_v49 }
  0xad   :  { %318 = vmatpush1.bf16.msra.mxu0 %v2126_v21  ;;  %v2139_v21 = vld [vmem:[#allocation17 + $0x20] sm:$0xff]  }
  0xae   :  { %1944 = vmatpush3.bf16.msra.mxu1 %v2134_v49 }
  0xaf   :  { %1961 = vmatprep.subr.bf16.mxu1 %v2135_v50 }
  0xb0   :  { %336 = vmatmul.mubr.bf16.vlgmr.msra.gmra.mrb[0].mxu0 %v199_v24 }
  0xb1   :  { %345 = vmatprep.mubr.bf16.mxu0 %v2428_v3 }
  0xb8   :  { %346 = vmatmul.mubr.bf16.gmra.mrb[4].mxu0 %v200_v27 }
  0xb9   :  { %355 = vmatprep.mubr.bf16.mxu0 %v2428_v3 }
  0xc0   :  { %356 = vmatmul.mubr.bf16.gmra.mrb[8].mxu0 %v201_v30 }
  0xc1   :  { %365 = vmatprep.mubr.bf16.mxu0 %v2428_v3 }
  0xc8   :  { %366 = vmatmul.mubr.bf16.gmra.mrb[12].mxu0 %v202_v33 }
  0xc9   :  { %375 = vmatprep.mubr.bf16.mxu0 %v2428_v3 }
  0xd0   :  { %376 = vmatmul.mubr.bf16.gmra.mrb[16].mxu0 %v203_v36 }
  0xd1   :  { %385 = vmatprep.mubr.bf16.mxu0 %v2428_v3 }
  0xd8   :  { %386 = vmatmul.mubr.bf16.gmra.mrb[20].mxu0 %v204_v39 }
  0xd9   :  { %395 = vmatprep.mubr.bf16.mxu0 %v2428_v3 }
  0xe0   :  { %396 = vmatmul.mubr.bf16.gmra.mrb[24].mxu0 %v205_v42 }
  0xe1   :  { %405 = vmatprep.mubr.bf16.mxu0 %v2428_v3 }
  0xe8   :  { %406 = vmatmul.mubr.bf16.gmra.mrb[28].mxu0 %v206_v45 }
 0x183   :  { %v337_v51 = vpop.f32.mrb[0].mxu0 }
 0x184   :  { %v432_v52 = vmul.f32 0.1, %v337_v51  ;;  %v2647_v53 = vpop.f32.mrb[1].mxu0  ;;  %vm416_vm0 = vcmp.gt.f32.partialorder %v337_v51, 0.0 }
 0x185   :  { %v341_v54 = vpop.f32.mrb[2].mxu0 }
 0x186   :  { %v433_v55 = vmul.f32 0.1, %v341_v54  ;;  %v2649_v56 = vpop.f32.mrb[3].mxu0  ;;  %vm417_vm1 = vcmp.gt.f32.partialorder %v341_v54, 0.0  ;;  %v448_v57 = vsel %vm416_vm0, %v337_v51, %v432_v52 }
 0x188   :  { %v449_v58 = vsel %vm417_vm1, %v341_v54, %v433_v55 }
 0x189   :  { %v464_v59 = vpack.c.bf16 %v449_v58, %v448_v57 }
 0x18b   :  { %v347_v60 = vpop.f32.mrb[4].mxu0  ;;  %1945 = vmatprep.mubr.bf16.mxu1 %v464_v59 }
 0x18c   :  { %v434_v61 = vmul.f32 0.1, %v347_v60  ;;  %v2651_v62 = vpop.f32.mrb[5].mxu0  ;;  %vm418_vm2 = vcmp.gt.f32.partialorder %v347_v60, 0.0 }
 0x18d   :  { %v351_v63 = vpop.f32.mrb[6].mxu0 }
 0x18e   :  { %vm419_vm3 = vcmp.gt.f32.partialorder %v351_v63, 0.0  ;;  %v435_v0 = vmul.f32 0.1, %v351_v63  ;;  %v2653_v1 = vpop.f32.mrb[7].mxu0  ;;  %v450_v2 = vsel %vm418_vm2, %v347_v60, %v434_v61 }
 0x190   :  { %v451_v3 = vsel %vm419_vm3, %v351_v63, %v435_v0 }
 0x191   :  { %v465_v4 = vpack.c.bf16 %v451_v3, %v450_v2  ;;  %v2140_v3 = vld [vmem:[#allocation17 + $0x28] sm:$0xff]  }
 0x193   :  { %v357_v6 = vpop.f32.mrb[8].mxu0  ;;  %1946 = vmatmul.mubr.bf16.vlgmr.msra.gmra.mrb[0].mxu1 %v465_v4  ;;  %v2141_v4 = vld [vmem:[#allocation17 + $0x30] sm:$0xff]  }
 0x194   :  { %v436_v7 = vmul.f32 0.1, %v357_v6  ;;  %v2655_v8 = vpop.f32.mrb[9].mxu0  ;;  %1962 = vmatpush3.bf16.msra.mxu1 %v2135_v50  ;;  %vm420_vm4 = vcmp.gt.f32.partialorder %v357_v6, 0.0 }
 0x195   :  { %v361_v9 = vpop.f32.mrb[10].mxu0  ;;  %1963 = vmatprep.subr.bf16.mxu1 %v2136_v5 }
 0x196   :  { %vm421_vm5 = vcmp.gt.f32.partialorder %v361_v9, 0.0  ;;  %v437_v11 = vmul.f32 0.1, %v361_v9  ;;  %v2657_v12 = vpop.f32.mrb[11].mxu0  ;;  %v452_v13 = vsel %vm420_vm4, %v357_v6, %v436_v7  ;;  %v2682_v6 = vld [vmem:[%s3066_s10] ss:$0 sm:$0xff] }
 0x197   :  { %s1018_s10 = sld [smem:[#allocation4]] }
 0x198   :  { %v453_v14 = vsel %vm421_vm5, %v361_v9, %v437_v11  ;;  %1964 = vmatpush3.bf16.msra.mxu1 %v2136_v5  ;;  %v2142_v5 = vld [vmem:[#allocation17 + $0x38] sm:$0xff]  }
 0x199   :  { %v466_v15 = vpack.c.bf16 %v453_v14, %v452_v13  ;;  %1965 = vmatprep.subr.bf16.mxu1 %v2137_v10 }
 0x19b   :  { %v367_v17 = vpop.f32.mrb[12].mxu0  ;;  %1949 = vmatprep.mubr.bf16.mxu1 %v466_v15 }
 0x19c   :  { %v438_v18 = vmul.f32 0.1, %v367_v17  ;;  %v2659_v19 = vpop.f32.mrb[13].mxu0  ;;  %1966 = vmatpush3.bf16.msra.mxu1 %v2137_v10  ;;  %vm422_vm6 = vcmp.gt.f32.partialorder %v367_v17, 0.0 }
 0x19d   :  { %v371_v20 = vpop.f32.mrb[14].mxu0  ;;  %1967 = vmatprep.subr.bf16.mxu1 %v2138_v16  ;;  %s1816_s28 = sshll.u32 %s1018_s10, 7 }
 0x19e   :  { %vm423_vm7 = vcmp.gt.f32.partialorder %v371_v20, 0.0  ;;  %v439_v22 = vmul.f32 0.1, %v371_v20  ;;  %v2661_v23 = vpop.f32.mrb[15].mxu0  ;;  %v454_v24 = vsel %vm422_vm6, %v367_v17, %v438_v18 }
 0x1a0   :  { %v455_v25 = vsel %vm423_vm7, %v371_v20, %v439_v22  ;;  %1968 = vmatpush3.bf16.msra.mxu1 %v2138_v16 }
 0x1a1   :  { %v467_v26 = vpack.c.bf16 %v455_v25, %v454_v24  ;;  %1969 = vmatprep.subr.bf16.mxu1 %v2139_v21 }
 0x1a3   :  { %v377_v27 = vpop.f32.mrb[16].mxu0  ;;  %1950 = vmatmul.mubr.bf16.gmra.mrb[4].mxu1 %v467_v26 }
 0x1a4   :  { %v440_v28 = vmul.f32 0.1, %v377_v27  ;;  %v2663_v29 = vpop.f32.mrb[17].mxu0  ;;  %1970 = vmatpush3.bf16.msra.mxu1 %v2139_v21  ;;  %vm424_vm8 = vcmp.gt.f32.partialorder %v377_v27, 0.0 }
 0x1a5   :  { %v381_v30 = vpop.f32.mrb[18].mxu0  ;;  %1971 = vmatprep.subr.bf16.mxu1 %v2140_v3 }
 0x1a6   :  { %vm425_vm9 = vcmp.gt.f32.partialorder %v381_v30, 0.0  ;;  %v441_v31 = vmul.f32 0.1, %v381_v30  ;;  %v2665_v32 = vpop.f32.mrb[19].mxu0  ;;  %v456_v33 = vsel %vm424_vm8, %v377_v27, %v440_v28 }
 0x1a8   :  { %v457_v34 = vsel %vm425_vm9, %v381_v30, %v441_v31  ;;  %1972 = vmatpush3.bf16.msra.mxu1 %v2140_v3 }
 0x1a9   :  { %v468_v35 = vpack.c.bf16 %v457_v34, %v456_v33  ;;  %1973 = vmatprep.subr.bf16.mxu1 %v2141_v4 }
 0x1ab   :  { %v387_v36 = vpop.f32.mrb[20].mxu0  ;;  %1953 = vmatprep.mubr.bf16.mxu1 %v468_v35 }
 0x1ac   :  { %v442_v37 = vmul.f32 0.1, %v387_v36  ;;  %v2667_v38 = vpop.f32.mrb[21].mxu0  ;;  %vm426_vm10 = vcmp.gt.f32.partialorder %v387_v36, 0.0  ;;  %1974 = vmatpush3.bf16.msra.mxu1 %v2141_v4 }
 0x1ad   :  { %v391_v39 = vpop.f32.mrb[22].mxu0  ;;  %1975 = vmatprep.subr.bf16.mxu1 %v2142_v5 }
 0x1ae   :  { %vm427_vm11 = vcmp.gt.f32.partialorder %v391_v39, 0.0  ;;  %v443_v40 = vmul.f32 0.1, %v391_v39  ;;  %v2669_v41 = vpop.f32.mrb[23].mxu0  ;;  %v458_v42 = vsel %vm426_vm10, %v387_v36, %v442_v37 }
 0x1b0   :  { %v459_v43 = vsel %vm427_vm11, %v391_v39, %v443_v40  ;;  %1976 = vmatpush3.bf16.msra.mxu1 %v2142_v5 }
 0x1b1   :  { %v469_v44 = vpack.c.bf16 %v459_v43, %v458_v42 }
 0x1b3   :  { %v397_v45 = vpop.f32.mrb[24].mxu0  ;;  %1954 = vmatmul.mubr.bf16.gmra.mrb[8].mxu1 %v469_v44 }
 0x1b4   :  { %v444_v46 = vmul.f32 0.1, %v397_v45  ;;  %v2671_v47 = vpop.f32.mrb[25].mxu0  ;;  %vm428_vm12 = vcmp.gt.f32.partialorder %v397_v45, 0.0 }
 0x1b5   :  { %v401_v48 = vpop.f32.mrb[26].mxu0 }
 0x1b6   :  { %vm429_vm13 = vcmp.gt.f32.partialorder %v401_v48, 0.0  ;;  %v445_v49 = vmul.f32 0.1, %v401_v48  ;;  %v2673_v50 = vpop.f32.mrb[27].mxu0  ;;  %v460_v51 = vsel %vm428_vm12, %v397_v45, %v444_v46 }
 0x1b8   :  { %v461_v52 = vsel %vm429_vm13, %v401_v48, %v445_v49 }
 0x1b9   :  { %v470_v54 = vpack.c.bf16 %v461_v52, %v460_v51 }
 0x1bb   :  { %v407_v55 = vpop.f32.mrb[28].mxu0  ;;  %1957 = vmatprep.mubr.bf16.mxu1 %v470_v54 }
 0x1bc   :  { %v446_v57 = vmul.f32 0.1, %v407_v55  ;;  %v2675_v58 = vpop.f32.mrb[29].mxu0  ;;  %vm430_vm14 = vcmp.gt.f32.partialorder %v407_v55, 0.0 }
 0x1bd   :  { %v411_v59 = vpop.f32.mrb[30].mxu0 }
 0x1be   :  { %vm431_vm15 = vcmp.gt.f32.partialorder %v411_v59, 0.0  ;;  %v447_v60 = vmul.f32 0.1, %v411_v59  ;;  %v2677_v61 = vpop.f32.mrb[31].mxu0  ;;  %v462_v63 = vsel %vm430_vm14, %v407_v55, %v446_v57 }
 0x1c0   :  { %v463_v0 = vsel %vm431_vm15, %v411_v59, %v447_v60 }
 0x1c1   :  { %v471_v2 = vpack.c.bf16 %v463_v0, %v462_v63 }
 0x1c3   :  { %1958 = vmatmul.mubr.bf16.gmra.mrb[12].mxu1 %v471_v2 }
 0x266   :  { %v1947_v7 = vpop.f32.mrb[0].mxu1 }
 0x267   :  { %v586_v9 = vadd.f32 %v1947_v7, %v2682_v6  ;;  %v577_v10 = vpop.f32.mrb[1].mxu1 }
 0x268   :  { %v578_v11 = vadd.f32 %v2682_v6, %v577_v10  ;;  %v1948_v13 = vpop.f32.mrb[2].mxu1 }
 0x269   :  { %v658_v14 = vmul.f32 0.1, %v586_v9  ;;  %v589_v15 = vadd.f32 %v1948_v13, %v2682_v6  ;;  %v580_v16 = vpop.f32.mrb[3].mxu1  ;;  %vm642_vm0 = vcmp.gt.f32.partialorder %v586_v9, 0.0 }
 0x26a   :  { %v656_v17 = vmul.f32 0.1, %v578_v11  ;;  %v581_v18 = vadd.f32 %v2682_v6, %v580_v16  ;;  %vm640_vm1 = vcmp.gt.f32.partialorder %v578_v11, 0.0 }
 0x26b   :  { %vm643_vm2 = vcmp.gt.f32.partialorder %v589_v15, 0.0  ;;  %v659_v20 = vmul.f32 0.1, %v589_v15  ;;  %v674_v22 = vsel %vm642_vm0, %v586_v9, %v658_v14 }
 0x26c   :  { %vm641_vm3 = vcmp.gt.f32.partialorder %v581_v18, 0.0  ;;  %v657_v21 = vmul.f32 0.1, %v581_v18  ;;  %v672_v26 = vsel %vm640_vm1, %v578_v11, %v656_v17 }
 0x26d   :  { %v675_v24 = vsel %vm643_vm2, %v589_v15, %v659_v20 }
 0x26e   :  { %v689_v25 = vpack.c.bf16 %v675_v24, %v674_v22  ;;  %v673_v27 = vsel %vm641_vm3, %v581_v18, %v657_v21 }
 0x26f   :  { %v688_v28 = vpack.c.bf16 %v673_v27, %v672_v26 }
 0x271   :  { %1977 = vmatprep.mubr.bf16.mxu1 %v688_v28 }
 0x272   :  { %1978 = vmatmul.mubr.bf16.vlgmr.msra.gmra.mrb[16].mxu1 %v689_v25 }
 0x276   :  { %v1951_v30 = vpop.f32.mrb[4].mxu1 }
 0x277   :  { %v602_v31 = vadd.f32 %v1951_v30, %v2682_v6  ;;  %v593_v33 = vpop.f32.mrb[5].mxu1 }
 0x278   :  { %v594_v34 = vadd.f32 %v2682_v6, %v593_v33  ;;  %v1952_v35 = vpop.f32.mrb[6].mxu1 }
 0x279   :  { %v662_v36 = vmul.f32 0.1, %v602_v31  ;;  %v605_v37 = vadd.f32 %v1952_v35, %v2682_v6  ;;  %v596_v39 = vpop.f32.mrb[7].mxu1  ;;  %vm646_vm4 = vcmp.gt.f32.partialorder %v602_v31, 0.0 }
 0x27a   :  { %v660_v40 = vmul.f32 0.1, %v594_v34  ;;  %v597_v42 = vadd.f32 %v2682_v6, %v596_v39  ;;  %vm644_vm5 = vcmp.gt.f32.partialorder %v594_v34, 0.0  ;;  %v1022_v39 = vlaneseq }
 0x27b   :  { %vm647_vm6 = vcmp.gt.f32.partialorder %v605_v37, 0.0  ;;  %v663_v43 = vmul.f32 0.1, %v605_v37  ;;  %v678_v45 = vsel %vm646_vm4, %v602_v31, %v662_v36 }
 0x27c   :  { %vm645_vm7 = vcmp.gt.f32.partialorder %v597_v42, 0.0  ;;  %v661_v44 = vmul.f32 0.1, %v597_v42  ;;  %v676_v48 = vsel %vm644_vm5, %v594_v34, %v660_v40  ;;  %v1023_v40 = vshrl.u32 %v1022_v39, 7 }
 0x27d   :  { %v679_v46 = vsel %vm647_vm6, %v605_v37, %v663_v43 }
 0x27e   :  { %v677_v49 = vsel %vm645_vm7, %v597_v42, %v661_v44  ;;  %v691_v51 = vpack.c.bf16 %v679_v46, %v678_v45  ;;  %v1020_v42 = vstv %s1816_s28  ;;  %v1041_v44 = vsub.s32 0, %v1023_v40 }
 0x27f   :  { %v690_v52 = vpack.c.bf16 %v677_v49, %v676_v48  ;;  %v1024_v45 = vadd.s32 8, %v1023_v40  ;;  %v1031_v48 = vadd.s32 64, %v1023_v40  ;;  %v1032_v49 = vadd.s32 72, %v1023_v40 }
 0x281   :  { %1981 = vmatprep.mubr.bf16.mxu1 %v690_v52  ;;  %v1026_v52 = vadd.s32 24, %v1023_v40 }
 0x282   :  { %1982 = vmatmul.mubr.bf16.gmra.mrb[20].mxu1 %v691_v51  ;;  %v1025_v51 = vadd.s32 16, %v1023_v40 }
 0x286   :  { %v1955_v54 = vpop.f32.mrb[8].mxu1 }
 0x287   :  { %v618_v55 = vadd.f32 %v1955_v54, %v2682_v6  ;;  %v609_v57 = vpop.f32.mrb[9].mxu1  ;;  %v1033_v54 = vadd.s32 80, %v1023_v40 }
 0x288   :  { %v610_v59 = vadd.f32 %v2682_v6, %v609_v57  ;;  %v1956_v60 = vpop.f32.mrb[10].mxu1  ;;  %v2429_v57 = vmov 1.0|1.0  }
 0x289   :  { %v666_v63 = vmul.f32 0.1, %v618_v55  ;;  %v621_v0 = vadd.f32 %v1956_v60, %v2682_v6  ;;  %v612_v2 = vpop.f32.mrb[11].mxu1  ;;  %vm650_vm8 = vcmp.gt.f32.partialorder %v618_v55, 0.0  ;;  %v1028_v60 = vadd.s32 40, %v1023_v40 }
 0x28a   :  { %v664_v3 = vmul.f32 0.1, %v610_v59  ;;  %v613_v4 = vadd.f32 %v2682_v6, %v612_v2  ;;  %vm648_vm9 = vcmp.gt.f32.partialorder %v610_v59, 0.0  ;;  %v1036_v2 = vadd.s32 104, %v1023_v40 }
 0x28b   :  { %vm651_vm10 = vcmp.gt.f32.partialorder %v621_v0, 0.0  ;;  %v667_v5 = vmul.f32 0.1, %v621_v0  ;;  %v682_v9 = vsel %vm650_vm8, %v618_v55, %v666_v63  ;;  %v1034_v55 = vadd.s32 88, %v1023_v40 }
 0x28c   :  { %vm649_vm11 = vcmp.gt.f32.partialorder %v613_v4, 0.0  ;;  %v665_v7 = vmul.f32 0.1, %v613_v4  ;;  %v680_v11 = vsel %vm648_vm9, %v610_v59, %v664_v3  ;;  %v1027_v59 = vadd.s32 32, %v1023_v40 }
 0x28d   :  { %v683_v10 = vsel %vm651_vm10, %v621_v0, %v667_v5  ;;  %v1035_v0 = vadd.s32 96, %v1023_v40  ;;  %v1029_v3 = vadd.s32 48, %v1023_v40  ;;  %v1030_v5 = vadd.s32 56, %v1023_v40 }
 0x28e   :  { %v681_v13 = vsel %vm649_vm11, %v613_v4, %v665_v7  ;;  %v693_v14 = vpack.c.bf16 %v683_v10, %v682_v9  ;;  %v1102_v7 = vld [vmem:[#allocation2 + $0x18] sm:$0xff] }
 0x28f   :  { %v692_v15 = vpack.c.bf16 %v681_v13, %v680_v11  ;;  %v1037_v11 = vadd.s32 112, %v1023_v40  ;;  %v1038_v13 = vadd.s32 120, %v1023_v40 }
 0x291   :  { %1985 = vmatprep.mubr.bf16.mxu1 %v692_v15 }
 0x292   :  { %1986 = vmatmul.mubr.bf16.gmra.mrb[24].mxu1 %v693_v14 }
 0x296   :  { %v1959_v16 = vpop.f32.mrb[12].mxu1 }
 0x297   :  { %v634_v17 = vadd.f32 %v1959_v16, %v2682_v6  ;;  %v625_v18 = vpop.f32.mrb[13].mxu1 }
 0x298   :  { %v626_v20 = vadd.f32 %v2682_v6, %v625_v18  ;;  %v1960_v21 = vpop.f32.mrb[14].mxu1 }
 0x299   :  { %v670_v22 = vmul.f32 0.1, %v634_v17  ;;  %v637_v24 = vadd.f32 %v1960_v21, %v2682_v6  ;;  %v628_v25 = vpop.f32.mrb[15].mxu1  ;;  %vm654_vm12 = vcmp.gt.f32.partialorder %v634_v17, 0.0 }
 0x29a   :  { %v668_v26 = vmul.f32 0.1, %v626_v20  ;;  %v629_v27 = vadd.f32 %v2682_v6, %v628_v25  ;;  %vm652_vm13 = vcmp.gt.f32.partialorder %v626_v20, 0.0  ;;  %v1017_v6 = vld [vmem:[%s152_s30] sm:$0x1] }
 0x29b   :  { %vm655_vm14 = vcmp.gt.f32.partialorder %v637_v24, 0.0  ;;  %v671_v28 = vmul.f32 0.1, %v637_v24  ;;  %v686_v31 = vsel %vm654_vm12, %v634_v17, %v670_v22  ;;  %v1021_v43 = vsub.s32 %v1017_v6, %v1020_v42 }
 0x29c   :  { %vm653_vm15 = vcmp.gt.f32.partialorder %v629_v27, 0.0  ;;  %v669_v30 = vmul.f32 0.1, %v629_v27  ;;  %v684_v34 = vsel %vm652_vm13, %v626_v20, %v668_v26 }
 0x29d   :  { %v687_v33 = vsel %vm655_vm14, %v637_v24, %v671_v28  ;;  %v1042_v46 = vrot.slane %v1021_v43, %v1041_v44 }
 0x29e   :  { %v685_v35 = vsel %vm653_vm15, %v629_v27, %v669_v30  ;;  %v695_v36 = vpack.c.bf16 %v687_v33, %v686_v31 }
 0x29f   :  { %v694_v37 = vpack.c.bf16 %v685_v35, %v684_v34  ;;  %vm1043_vm0 = vcmp.eq.s32.totalorder %v1042_v46, %v1023_v40  ;;  %vm1044_vm1 = vcmp.eq.s32.totalorder %v1042_v46, %v1024_v45  ;;  %vm1051_vm2 = vcmp.eq.s32.totalorder %v1042_v46, %v1031_v48 }
 0x2a0   :  { %vm1052_vm3 = vcmp.eq.s32.totalorder %v1042_v46, %v1032_v49  ;;  %vm1833_vm4 = vmpackc.low %vm1044_vm1, %vm1043_vm0  ;;  %vm1045_vm5 = vcmp.eq.s32.totalorder %v1042_v46, %v1025_v51  ;;  %vm1046_vm6 = vcmp.eq.s32.totalorder %v1042_v46, %v1026_v52  ;;  %vm1053_vm7 = vcmp.eq.s32.totalorder %v1042_v46, %v1033_v54 }
 0x2a1   :  { %1989 = vmatprep.mubr.bf16.mxu1 %v694_v37  ;;  %2009 = vmatprep.mubr.msk.bf16.mxu0 %vm1833_vm4, %v2429_v57  ;;  %vm1841_vm8 = vmpackc.low %vm1052_vm3, %vm1051_vm2  ;;  %vm1054_vm10 = vcmp.eq.s32.totalorder %v1042_v46, %v1034_v55  ;;  %vm1047_vm12 = vcmp.eq.s32.totalorder %v1042_v46, %v1027_v59  ;;  %vm1048_vm13 = vcmp.eq.s32.totalorder %v1042_v46, %v1028_v60 }
 0x2a2   :  { %1990 = vmatmul.mubr.bf16.gmra.mrb[28].mxu1 %v695_v36  ;;  %vm2707_vm9 = vmpackc.low %vm1046_vm6, %vm1045_vm5  ;;  %vm1055_vm15 = vcmp.eq.s32.totalorder %v1042_v46, %v1035_v0  ;;  %vm1056_vm0 = vcmp.eq.s32.totalorder %v1042_v46, %v1036_v2  ;;  %vm1049_vm1 = vcmp.eq.s32.totalorder %v1042_v46, %v1029_v3  ;;  %vm1050_vm3 = vcmp.eq.s32.totalorder %v1042_v46, %v1030_v5 }
 0x2a3   :  { %2017 = vmatprep.mubr.msk.bf16.mxu1 %vm1841_vm8, %v2429_v57  ;;  %vm2711_vm11 = vmpackc.low %vm1054_vm10, %vm1053_vm7  ;;  %vm1057_vm5 = vcmp.eq.s32.totalorder %v1042_v46, %v1037_v11  ;;  %vm1058_vm6 = vcmp.eq.s32.totalorder %v1042_v46, %v1038_v13 }
 0x2a4   :  { %vm2715_vm14 = vmpackc.low %vm1048_vm13, %vm1047_vm12 }
 0x2a5   :  { %vm2719_vm2 = vmpackc.low %vm1056_vm0, %vm1055_vm15 }
 0x2a6   :  { %vm2723_vm4 = vmpackc.low %vm1050_vm3, %vm1049_vm1 }
 0x2a7   :  { %vm2727_vm7 = vmpackc.low %vm1058_vm6, %vm1057_vm5 }
 0x345   :  { %v1979_v15 = vpop.f32.mrb[16].mxu1 }
 0x346   :  { %v875_v16 = vand.u32 2147483647, %v1979_v15  ;;  %v2731_v17 = vpop.f32.mrb[17].mxu1 }
 0x347   :  { %v873_v18 = vand.u32 2147483647, %v2731_v17  ;;  %v2734_v20 = vpop.f32.mrb[18].mxu1 }
 0x348   :  { %v891_v21 = vsub.f32 0.0, %v875_v16  ;;  %v876_v22 = vand.u32 2147483647, %v2734_v20  ;;  %v2737_v24 = vpop.f32.mrb[19].mxu1 }
 0x349   :  { %v889_v25 = vsub.f32 0.0, %v873_v18  ;;  %v874_v26 = vand.u32 2147483647, %v2737_v24  ;;  %v859_v18 = vmax.f32 %v1979_v15, 0.0  ;;  %v858_v15 = vmax.f32 %v2737_v24, 0.0 }
 0x34a   :  { %v909_v27 = vmul.f32 1.442695, %v891_v21  ;;  %v892_v28 = vsub.f32 0.0, %v876_v22 }
 0x34b   :  { %v905_v30 = vmul.f32 1.442695, %v889_v25  ;;  %v890_v31 = vsub.f32 0.0, %v874_v26  ;;  %v857_v25 = vmax.f32 %v2731_v17, 0.0 }
 0x34c   :  { %2143 = vpow2.f32 %v909_v27  ;;  %v911_v33 = vmul.f32 1.442695, %v892_v28 }
 0x34d   :  { %2145 = vpow2.f32 %v905_v30  ;;  %v907_v34 = vmul.f32 1.442695, %v890_v31  ;;  %v860_v31 = vmax.f32 %v2734_v20, 0.0 }
 0x34e   :  { %2147 = vpow2.f32 %v911_v33 }
 0x34f   :  { %2149 = vpow2.f32 %v907_v34 }
 0x355   :  { %v2740_v35 = vpop.f32.mrb[20].mxu1 }
 0x356   :  { %v2144_v36 = vpop.eup %2143  ;;  %v879_v37 = vand.u32 2147483647, %v2740_v35  ;;  %v2743_v39 = vpop.f32.mrb[21].mxu1 }
 0x357   :  { %v2146_v40 = vpop.eup %2145  ;;  %v939_v6 = vadd.f32 1.0, %v2144_v36  ;;  %v877_v42 = vand.u32 2147483647, %v2743_v39  ;;  %v2746_v43 = vpop.f32.mrb[22].mxu1 }
 0x358   :  { %v2148_v44 = vpop.eup %2147  ;;  %v937_v45 = vadd.f32 1.0, %v2146_v40  ;;  %v895_v46 = vsub.f32 0.0, %v879_v37  ;;  %v880_v48 = vand.u32 2147483647, %v2746_v43  ;;  %v2749_v49 = vpop.f32.mrb[23].mxu1 }
 0x359   :  { %v2150_v51 = vpop.eup %2149  ;;  %2151 = vlog2.f32 %v939_v6  ;;  %v940_v52 = vadd.f32 1.0, %v2148_v44  ;;  %v893_v54 = vsub.f32 0.0, %v877_v42  ;;  %v878_v2 = vand.u32 2147483647, %v2749_v49 }
 0x35a   :  { %2153 = vlog2.f32 %v937_v45  ;;  %v938_v55 = vadd.f32 1.0, %v2150_v51  ;;  %v917_v59 = vmul.f32 1.442695, %v895_v46  ;;  %v896_v60 = vsub.f32 0.0, %v880_v48 }
 0x35b   :  { %2155 = vlog2.f32 %v940_v52  ;;  %v913_v0 = vmul.f32 1.442695, %v893_v54  ;;  %v894_v5 = vsub.f32 0.0, %v878_v2 }
 0x35c   :  { %2157 = vlog2.f32 %v938_v55  ;;  %v919_v3 = vmul.f32 1.442695, %v896_v60 }
 0x35d   :  { %2159 = vpow2.f32 %v917_v59  ;;  %v915_v11 = vmul.f32 1.442695, %v894_v5 }
 0x35e   :  { %2161 = vpow2.f32 %v913_v0 }
 0x35f   :  { %2163 = vpow2.f32 %v919_v3 }
 0x360   :  { %2165 = vpow2.f32 %v915_v11 }
 0x363   :  { %v2152_v13 = vpop.eup %2151 }
 0x364   :  { %v2154_v16 = vpop.eup %2153  ;;  %v958_v21 = vmul.f32 0.6931472, %v2152_v13 }
 0x365   :  { %v2156_v22 = vpop.eup %2155  ;;  %v954_v26 = vmul.f32 0.6931472, %v2154_v16  ;;  %v2753_v27 = vpop.f32.mrb[24].mxu1 }
 0x366   :  { %v2158_v28 = vpop.eup %2157  ;;  %v987_v30 = vadd.f32 %v958_v21, %v859_v18  ;;  %v960_v33 = vmul.f32 0.6931472, %v2156_v22  ;;  %v883_v34 = vand.u32 2147483647, %v2753_v27  ;;  %v2757_v36 = vpop.f32.mrb[25].mxu1 }
 0x367   :  { %v2160_v37 = vpop.eup %2159  ;;  %v985_v40 = vadd.f32 %v954_v26, %v857_v25  ;;  %v956_v6 = vmul.f32 0.6931472, %v2158_v28  ;;  %v881_v42 = vand.u32 2147483647, %v2757_v36  ;;  %v2761_v17 = vpop.f32.mrb[26].mxu1  ;;  %v863_v28 = vmax.f32 %v2740_v35, 0.0 }
 0x368   :  { %v2162_v44 = vpop.eup %2161  ;;  %v1003_v45 = vmul.f32 %v987_v30, %v2651_v62  ;;  %v988_v46 = vadd.f32 %v960_v33, %v860_v31  ;;  %v943_v48 = vadd.f32 1.0, %v2160_v37  ;;  %v899_v20 = vsub.f32 0.0, %v883_v34  ;;  %v2764_v51 = vpop.f32.mrb[27].mxu1 }
 0x369   :  { %v2164_v52 = vpop.eup %2163  ;;  %v1001_v54 = vmul.f32 %v985_v40, %v2647_v53  ;;  %v986_v55 = vadd.f32 %v956_v6, %v858_v15  ;;  %v941_v59 = vadd.f32 1.0, %v2162_v44  ;;  %v897_v60 = vsub.f32 0.0, %v881_v42 }
 0x36a   :  { %v1004_v24 = vmul.f32 %v988_v46, %v2653_v1  ;;  %2167 = vlog2.f32 %v943_v48  ;;  %v944_v0 = vadd.f32 1.0, %v2164_v52  ;;  %v925_v2 = vmul.f32 1.442695, %v899_v20  ;;  %v2166_v3 = vpop.eup %2165 }
 0x36b   :  { %v1002_v5 = vmul.f32 %v986_v55, %v2649_v56  ;;  %2169 = vlog2.f32 %v941_v59  ;;  %v921_v62 = vmul.f32 1.442695, %v897_v60  ;;  %v942_v11 = vadd.f32 1.0, %v2166_v3 }
 0x36c   :  { %2171 = vlog2.f32 %v944_v0  ;;  %v884_v13 = vand.u32 2147483647, %v2761_v17  ;;  %v882_v53 = vand.u32 2147483647, %v2764_v51  ;;  %v1116_v18 = vpack.c.bf16 %v1004_v24, %v1003_v45 }
 0x36d   :  { %2173 = vpow2.f32 %v925_v2  ;;  %v1115_v16 = vpack.c.bf16 %v1002_v5, %v1001_v54  ;;  %v861_v34 = vmax.f32 %v2743_v39, 0.0  ;;  %v864_v44 = vmax.f32 %v2746_v43, 0.0 }
 0x36e   :  { %2175 = vlog2.f32 %v942_v11  ;;  %v900_v21 = vsub.f32 0.0, %v884_v13  ;;  %v898_v1 = vsub.f32 0.0, %v882_v53  ;;  %v862_v52 = vmax.f32 %v2749_v49, 0.0 }
 0x36f   :  { %2177 = vpow2.f32 %v921_v62  ;;  %1993 = vmatprep.subr.bf16.mxu0 %v1115_v16  ;;  %2057 = vmatprep.subr.bf16.mxu1 %v1115_v16 }
 0x370   :  { %v927_v22 = vmul.f32 1.442695, %v900_v21  ;;  %1994 = vmatpush3.bf16.msra.mxu0 %v1115_v16  ;;  %2065 = vmatpush3.bf16.msra.mxu1 %v1115_v16  ;;  %v923_v56 = vmul.f32 1.442695, %v898_v1 }
 0x371   :  { %1995 = vmatprep.subr.bf16.mxu0 %v1116_v18  ;;  %2058 = vmatprep.subr.bf16.mxu1 %v1116_v18 }
 0x372   :  { %2179 = vpow2.f32 %v927_v22 }
 0x373   :  { %2181 = vpow2.f32 %v923_v56 }
 0x374   :  { %v2168_v25 = vpop.eup %2167  ;;  %1996 = vmatpush3.bf16.msra.mxu0 %v1116_v18  ;;  %2066 = vmatpush3.bf16.msra.mxu1 %v1116_v18 }
 0x375   :  { %v2170_v26 = vpop.eup %2169  ;;  %v966_v30 = vmul.f32 0.6931472, %v2168_v25  ;;  %v2772_v31 = vpop.f32.mrb[28].mxu1 }
 0x376   :  { %v2172_v33 = vpop.eup %2171  ;;  %v962_v37 = vmul.f32 0.6931472, %v2170_v26  ;;  %v887_v40 = vand.u32 2147483647, %v2772_v31  ;;  %v2776_v15 = vpop.f32.mrb[29].mxu1 }
 0x377   :  { %v2174_v6 = vpop.eup %2173  ;;  %v991_v42 = vadd.f32 %v966_v30, %v863_v28  ;;  %v968_v45 = vmul.f32 0.6931472, %v2172_v33  ;;  %v885_v46 = vand.u32 2147483647, %v2776_v15  ;;  %v2780_v48 = vpop.f32.mrb[30].mxu1  ;;  %v867_v28 = vmax.f32 %v2753_v27, 0.0 }
 0x378   :  { %v2176_v35 = vpop.eup %2175  ;;  %v989_v20 = vadd.f32 %v962_v37, %v861_v34  ;;  %v947_v54 = vadd.f32 1.0, %v2174_v6  ;;  %v903_v39 = vsub.f32 0.0, %v887_v40  ;;  %v2783_v55 = vpop.f32.mrb[31].mxu1  ;;  %v888_v49 = vand.u32 2147483647, %v2780_v48 }
 0x379   :  { %v2178_v59 = vpop.eup %2177  ;;  %v1007_v60 = vmul.f32 %v991_v42, %v2659_v19  ;;  %v992_v24 = vadd.f32 %v968_v45, %v864_v44  ;;  %v964_v0 = vmul.f32 0.6931472, %v2176_v35  ;;  %v901_v2 = vsub.f32 0.0, %v885_v46 }
 0x37a   :  { %v1005_v43 = vmul.f32 %v989_v20, %v2655_v8  ;;  %2183 = vlog2.f32 %v947_v54  ;;  %v945_v3 = vadd.f32 1.0, %v2178_v59  ;;  %v933_v5 = vmul.f32 1.442695, %v903_v39 }
 0x37b   :  { %v1008_v62 = vmul.f32 %v992_v24, %v2661_v23  ;;  %v990_v11 = vadd.f32 %v964_v0, %v862_v52  ;;  %v929_v13 = vmul.f32 1.442695, %v901_v2  ;;  %v886_v16 = vand.u32 2147483647, %v2783_v55 }
 0x37c   :  { %v2180_v53 = vpop.eup %2179  ;;  %2185 = vlog2.f32 %v945_v3  ;;  %v904_v1 = vsub.f32 0.0, %v888_v49  ;;  %v865_v40 = vmax.f32 %v2757_v36, 0.0  ;;  %v868_v54 = vmax.f32 %v2761_v17, 0.0 }
 0x37d   :  { %v2182_v18 = vpop.eup %2181  ;;  %v1006_v19 = vmul.f32 %v990_v11, %v2657_v12  ;;  %v948_v21 = vadd.f32 1.0, %v2180_v53  ;;  %2187 = vpow2.f32 %v933_v5  ;;  %v902_v22 = vsub.f32 0.0, %v886_v16 }
 0x37e   :  { %v946_v8 = vadd.f32 1.0, %v2182_v18  ;;  %2189 = vpow2.f32 %v929_v13  ;;  %v1118_v56 = vpack.c.bf16 %v1008_v62, %v1007_v60  ;;  %v935_v23 = vmul.f32 1.442695, %v904_v1 }
 0x37f   :  { %2191 = vlog2.f32 %v948_v21  ;;  %v1117_v25 = vpack.c.bf16 %v1006_v19, %v1005_v43  ;;  %v931_v26 = vmul.f32 1.442695, %v902_v22  ;;  %v866_v60 = vmax.f32 %v2764_v51, 0.0 }
 0x380   :  { %2193 = vlog2.f32 %v946_v8  ;;  %v871_v11 = vmax.f32 %v2772_v31, 0.0  ;;  %v869_v49 = vmax.f32 %v2776_v15, 0.0  ;;  %v872_v21 = vmax.f32 %v2780_v48, 0.0  ;;  %v1110_v48 = vld [vmem:[#allocation2 + $0x58] sm:$0xff] }
 0x381   :  { %2195 = vpow2.f32 %v935_v23  ;;  %1997 = vmatprep.subr.bf16.mxu0 %v1117_v25  ;;  %2059 = vmatprep.subr.bf16.mxu1 %v1117_v25  ;;  %v870_v31 = vmax.f32 %v2783_v55, 0.0 }
 0x382   :  { %2197 = vpow2.f32 %v931_v26  ;;  %1998 = vmatpush3.bf16.msra.mxu0 %v1117_v25  ;;  %2067 = vmatpush3.bf16.msra.mxu1 %v1117_v25 }
 0x383   :  { %1999 = vmatprep.subr.bf16.mxu0 %v1118_v56  ;;  %2060 = vmatprep.subr.bf16.mxu1 %v1118_v56 }
 0x384   :  { %v2184_v12 = vpop.eup %2183 }
 0x385   :  { %v974_v30 = vmul.f32 0.6931472, %v2184_v12 }
 0x386   :  { %v2186_v33 = vpop.eup %2185  ;;  %2000 = vmatpush3.bf16.msra.mxu0 %v1118_v56  ;;  %2068 = vmatpush3.bf16.msra.mxu1 %v1118_v56 }
 0x387   :  { %v2188_v34 = vpop.eup %2187  ;;  %v995_v37 = vadd.f32 %v974_v30, %v867_v28  ;;  %v970_v6 = vmul.f32 0.6931472, %v2186_v33  ;;  %v1100_v33 = vld [vmem:[#allocation2 + $0x8] sm:$0xff] }
 0x388   :  { %v2190_v42 = vpop.eup %2189  ;;  %v951_v44 = vadd.f32 1.0, %v2188_v34  ;;  %v1108_v34 = vld [vmem:[#allocation2 + $0x48] sm:$0xff] }
 0x389   :  { %v2192_v45 = vpop.eup %2191  ;;  %v1011_v46 = vmul.f32 %v995_v37, %v2667_v38  ;;  %v993_v35 = vadd.f32 %v970_v6, %v865_v40  ;;  %v949_v20 = vadd.f32 1.0, %v2190_v42 }
 0x38a   :  { %v2194_v52 = vpop.eup %2193  ;;  %v976_v27 = vmul.f32 0.6931472, %v2192_v45  ;;  %2199 = vlog2.f32 %v951_v44 }
 0x38b   :  { %v2196_v39 = vpop.eup %2195  ;;  %v1009_v59 = vmul.f32 %v993_v35, %v2663_v29  ;;  %v972_v24 = vmul.f32 0.6931472, %v2194_v52  ;;  %2201 = vlog2.f32 %v949_v20  ;;  %v1105_v35 = vld [vmem:[#allocation2 + $0x30] sm:$0xff]  ;;  %v1103_v52 = vld [vmem:[#allocation2 + $0x20] sm:$0xff] }
 0x38c   :  { %v2198_v36 = vpop.eup %2197  ;;  %v996_v0 = vadd.f32 %v976_v27, %v868_v54  ;;  %v952_v2 = vadd.f32 1.0, %v2196_v39  ;;  %v1113_v20 = vld [vmem:[#allocation2 + $0x70] sm:$0xff]  ;;  %v1111_v54 = vld [vmem:[#allocation2 + $0x60] sm:$0xff] }
 0x38d   :  { %v994_v43 = vadd.f32 %v972_v24, %v866_v60  ;;  %v950_v3 = vadd.f32 1.0, %v2198_v36  ;;  %v1114_v60 = vld [vmem:[#allocation2 + $0x78] sm:$0xff] }
 0x38e   :  { %v1012_v38 = vmul.f32 %v996_v0, %v2669_v41  ;;  %2203 = vlog2.f32 %v952_v2 }
 0x38f   :  { %v1010_v5 = vmul.f32 %v994_v43, %v2665_v32  ;;  %2205 = vlog2.f32 %v950_v3  ;;  %v1104_v43 = vld [vmem:[#allocation2 + $0x28] sm:$0xff] }
 0x390   :  { %v1120_v17 = vpack.c.bf16 %v1012_v38, %v1011_v46  ;;  %v1112_v3 = vld [vmem:[#allocation2 + $0x68] sm:$0xff] }
 0x391   :  { %v1119_v62 = vpack.c.bf16 %v1010_v5, %v1009_v59  ;;  %v1106_v59 = vld [vmem:[#allocation2 + $0x38] sm:$0xff] }
 0x393   :  { %2001 = vmatprep.subr.bf16.mxu0 %v1119_v62  ;;  %2061 = vmatprep.subr.bf16.mxu1 %v1119_v62 }
 0x394   :  { %v2200_v29 = vpop.eup %2199  ;;  %2002 = vmatpush3.bf16.msra.mxu0 %v1119_v62  ;;  %2069 = vmatpush3.bf16.msra.mxu1 %v1119_v62 }
 0x395   :  { %v2202_v51 = vpop.eup %2201  ;;  %v982_v13 = vmul.f32 0.6931472, %v2200_v29  ;;  %2003 = vmatprep.subr.bf16.mxu0 %v1120_v17  ;;  %2062 = vmatprep.subr.bf16.mxu1 %v1120_v17 }
 0x396   :  { %v978_v41 = vmul.f32 0.6931472, %v2202_v51 }
 0x397   :  { %v999_v53 = vadd.f32 %v982_v13, %v871_v11 }
 0x398   :  { %v2204_v16 = vpop.eup %2203  ;;  %v997_v32 = vadd.f32 %v978_v41, %v869_v49  ;;  %2004 = vmatpush3.bf16.msra.mxu0 %v1120_v17  ;;  %2070 = vmatpush3.bf16.msra.mxu1 %v1120_v17 }
 0x399   :  { %v2206_v18 = vpop.eup %2205  ;;  %v1015_v19 = vmul.f32 %v999_v53, %v2675_v58  ;;  %v984_v1 = vmul.f32 0.6931472, %v2204_v16  ;;  %v1099_v58 = vld [vmem:[#allocation2] sm:$0xff] }
 0x39a   :  { %v1013_v8 = vmul.f32 %v997_v32, %v2671_v47  ;;  %v980_v22 = vmul.f32 0.6931472, %v2206_v18  ;;  %v1101_v47 = vld [vmem:[#allocation2 + $0x10] sm:$0xff] }
 0x39b   :  { %v1000_v56 = vadd.f32 %v984_v1, %v872_v21 }
 0x39c   :  { %v998_v23 = vadd.f32 %v980_v22, %v870_v31 }
 0x39d   :  { %v1016_v15 = vmul.f32 %v1000_v56, %v2677_v61  ;;  %v1107_v61 = vld [vmem:[#allocation2 + $0x40] sm:$0xff] }
 0x39e   :  { %v1014_v25 = vmul.f32 %v998_v23, %v2673_v50  ;;  %v1109_v50 = vld [vmem:[#allocation2 + $0x50] sm:$0xff] }
 0x39f   :  { %v1122_v26 = vpack.c.bf16 %v1016_v15, %v1015_v19 }
 0x3a0   :  { %v1121_v12 = vpack.c.bf16 %v1014_v25, %v1013_v8 }
 0x3a2   :  { %2005 = vmatprep.subr.bf16.mxu0 %v1121_v12  ;;  %2063 = vmatprep.subr.bf16.mxu1 %v1121_v12 }
 0x3a3   :  { %2006 = vmatpush3.bf16.msra.mxu0 %v1121_v12  ;;  %2071 = vmatpush3.bf16.msra.mxu1 %v1121_v12 }
 0x3a4   :  { %2007 = vmatprep.subr.bf16.mxu0 %v1122_v26  ;;  %2064 = vmatprep.subr.bf16.mxu1 %v1122_v26 }
 0x3a7   :  { %2008 = vmatpush3.bf16.msra.mxu0 %v1122_v26  ;;  %2072 = vmatpush3.bf16.msra.mxu1 %v1122_v26 }
 0x3aa   :  { %2010 = vmatmul.mubr.msk.bf16.vlgmr.msra.gmra.mrb[32].mxu0 %vm2707_vm9, %v2429_v57  ;;  %2018 = vmatmul.mubr.msk.bf16.vlgmr.msra.gmra.mrb[32].mxu1 %vm2711_vm11, %v2429_v57 }
 0x3ab   :  { %2013 = vmatprep.mubr.msk.bf16.mxu0 %vm2715_vm14, %v2429_v57  ;;  %2021 = vmatprep.mubr.msk.bf16.mxu1 %vm2719_vm2, %v2429_v57 }
 0x3b2   :  { %2014 = vmatmul.mubr.msk.bf16.gmra.mrb[36].mxu0 %vm2723_vm4, %v2429_v57  ;;  %2022 = vmatmul.mubr.msk.bf16.gmra.mrb[36].mxu1 %vm2727_vm7, %v2429_v57 }
 0x47d   :  { %v2011_v63 = vpop.f32.mrb[32].mxu0  ;;  %v2019_v4 = vpop.f32.mrb[32].mxu1 }
 0x47e   :  { %v1222_v55 = vadd.f32 %v2011_v63, %v1101_v47  ;;  %v1230_v28 = vadd.f32 %v2019_v4, %v1109_v50  ;;  %v1157_v9 = vpop.f32.mrb[33].mxu0  ;;  %v1189_v30 = vpop.f32.mrb[33].mxu1 }
 0x47f   :  { %v1220_v10 = vadd.f32 %v1157_v9, %v1099_v58  ;;  %v1228_v37 = vadd.f32 %v1189_v30, %v1107_v61  ;;  %v2012_v40 = vpop.f32.mrb[34].mxu0  ;;  %v2020_v6 = vpop.f32.mrb[34].mxu1 }
 0x480   :  { %1238 = vst [vmem:[#allocation2 + $0x10] sm:$0xff] %v1222_v55  ;;  %1246 = vst [vmem:[#allocation2 + $0x50] sm:$0xff] %v1230_v28  ;;  %v1223_v57 = vadd.f32 %v2012_v40, %v1102_v7  ;;  %v1231_v14 = vadd.f32 %v2020_v6, %v1110_v48  ;;  %v1160_v42 = vpop.f32.mrb[35].mxu0  ;;  %v1192_v44 = vpop.f32.mrb[35].mxu1 }
 0x481   :  { %1236 = vst [vmem:[#allocation2] sm:$0xff] %v1220_v10  ;;  %1244 = vst [vmem:[#allocation2 + $0x40] sm:$0xff] %v1228_v37  ;;  %v1221_v45 = vadd.f32 %v1160_v42, %v1100_v33  ;;  %v1229_v46 = vadd.f32 %v1192_v44, %v1108_v34 }
 0x482   :  { %1239 = vst [vmem:[#allocation2 + $0x18] sm:$0xff] %v1223_v57  ;;  %1247 = vst [vmem:[#allocation2 + $0x58] sm:$0xff] %v1231_v14 }
 0x483   :  { %1237 = vst [vmem:[#allocation2 + $0x8] sm:$0xff] %v1221_v45  ;;  %1245 = vst [vmem:[#allocation2 + $0x48] sm:$0xff] %v1229_v46 }
 0x485   :  { %v2015_v27 = vpop.f32.mrb[36].mxu0  ;;  %v2023_v39 = vpop.f32.mrb[36].mxu1 }
 0x486   :  { %v1226_v24 = vadd.f32 %v2015_v27, %v1105_v35  ;;  %v1234_v36 = vadd.f32 %v2023_v39, %v1113_v20  ;;  %v1173_v0 = vpop.f32.mrb[37].mxu0  ;;  %v1205_v2 = vpop.f32.mrb[37].mxu1 }
 0x487   :  { %v1224_v38 = vadd.f32 %v1173_v0, %v1103_v52  ;;  %v1232_v5 = vadd.f32 %v1205_v2, %v1111_v54  ;;  %v2016_v17 = vpop.f32.mrb[38].mxu0  ;;  %v2024_v62 = vpop.f32.mrb[38].mxu1 }
 0x488   :  { %1242 = vst [vmem:[#allocation2 + $0x30] sm:$0xff] %v1226_v24  ;;  %1250 = vst [vmem:[#allocation2 + $0x70] sm:$0xff] %v1234_v36  ;;  %v1227_v29 = vadd.f32 %v2016_v17, %v1106_v59  ;;  %v1235_v51 = vadd.f32 %v2024_v62, %v1114_v60  ;;  %v1176_v11 = vpop.f32.mrb[39].mxu0  ;;  %v1208_v13 = vpop.f32.mrb[39].mxu1 }
 0x489   :  { %1240 = vst [vmem:[#allocation2 + $0x20] sm:$0xff] %v1224_v38  ;;  %1248 = vst [vmem:[#allocation2 + $0x60] sm:$0xff] %v1232_v5  ;;  %v1225_v49 = vadd.f32 %v1176_v11, %v1104_v43  ;;  %v1233_v41 = vadd.f32 %v1208_v13, %v1112_v3 }
 0x48a   :  { %1243 = vst [vmem:[#allocation2 + $0x38] sm:$0xff] %v1227_v29  ;;  %1251 = vst [vmem:[#allocation2 + $0x78] sm:$0xff] %v1235_v51 }
 0x48b   :  { %1241 = vst [vmem:[#allocation2 + $0x28] sm:$0xff] %v1225_v49  ;;  %1249 = vst [vmem:[#allocation2 + $0x68] sm:$0xff] %v1233_v41 }
 0x48c PF:  { %s1252_s1 = sld [smem:[#allocation7]] }
 0x492   :  { %p1849_p3 = scmp.eq.s32.totalorder %s1252_s1, 0 }
 0x493   :  { %v2207_v53 = vld [vmem:[#allocation18] sm:$0xff] (!%p1849_p3)   ;;  %v2208_v16 = vld [vmem:[#allocation18 + $0x8] sm:$0xff] (!%p1849_p3)   ;;  %v2209_v32 = vld [vmem:[#allocation18 + $0x10] sm:$0xff] (!%p1849_p3)  }
 0x494   :  { %1256 = sbr.rel (%p1849_p3) target bundleno = 1647 (0x66f), region = 77  ;;  %2025 = vmatprep.subr.bf16.mxu0 (!%p1849_p3), %v2207_v53  ;;  %2073 = vmatprep.subr.bf16.mxu1 (!%p1849_p3), %v2207_v53  ;;  %v2210_v18 = vld [vmem:[#allocation18 + $0x18] sm:$0xff] (!%p1849_p3)   ;;  %v1257_v19 = vld [vmem:[#allocation9] sm:$0xff] (!%p1849_p3)  ;;  %v1258_v21 = vld [vmem:[#allocation9 + $0x8] sm:$0xff] (!%p1849_p3) }
 0x495   :  { %2026 = vmatpush3.bf16.msra.mxu0 (!%p1849_p3), %v2207_v53  ;;  %2081 = vmatpush3.bf16.msra.mxu1 (!%p1849_p3), %v2207_v53  ;;  %v1265_v1 = vld [vmem:[#allocation9 + $0x40] sm:$0xff] (!%p1849_p3)  ;;  %v1273_v8 = vpack.c.bf16 (!%p1849_p3), %v1258_v21, %v1257_v19  ;;  %v1266_v31 = vld [vmem:[#allocation9 + $0x48] sm:$0xff] (!%p1849_p3)  ;;  %v2213_v15 = vld [vmem:[#allocation18 + $0x30] sm:$0xff] (!%p1849_p3)  }
 0x496   :  { %2027 = vmatprep.subr.bf16.mxu0 (!%p1849_p3), %v2208_v16  ;;  %2074 = vmatprep.subr.bf16.mxu1 (!%p1849_p3), %v2208_v16  ;;  %v1277_v22 = vpack.c.bf16 (!%p1849_p3), %v1266_v31, %v1265_v1  ;;  %v2211_v56 = vld [vmem:[#allocation18 + $0x20] sm:$0xff] (!%p1849_p3)   ;;  %v2212_v23 = vld [vmem:[#allocation18 + $0x28] sm:$0xff] (!%p1849_p3)   ;;  %v2214_v25 = vld [vmem:[#allocation18 + $0x38] sm:$0xff] (!%p1849_p3)  }
 0x497   :  { %2041 = vmatprep.mubr.bf16.mxu0 (!%p1849_p3), %v1273_v8  ;;  %v1259_v26 = vld [vmem:[#allocation9 + $0x10] sm:$0xff] (!%p1849_p3)  ;;  %v1260_v12 = vld [vmem:[#allocation9 + $0x18] sm:$0xff] (!%p1849_p3)  ;;  %v1261_v58 = vld [vmem:[#allocation9 + $0x20] sm:$0xff] (!%p1849_p3) }
 0x498   :  { %2049 = vmatprep.mubr.bf16.mxu1 (!%p1849_p3), %v1277_v22  ;;  %v1267_v47 = vld [vmem:[#allocation9 + $0x50] sm:$0xff] (!%p1849_p3)  ;;  %v1268_v50 = vld [vmem:[#allocation9 + $0x58] sm:$0xff] (!%p1849_p3)  ;;  %v1262_v61 = vld [vmem:[#allocation9 + $0x28] sm:$0xff] (!%p1849_p3)  ;;  %v1274_v7 = vpack.c.bf16 (!%p1849_p3), %v1260_v12, %v1259_v26 }
 0x499   :  { %2028 = vmatpush3.bf16.msra.mxu0 (!%p1849_p3), %v2208_v16  ;;  %2082 = vmatpush3.bf16.msra.mxu1 (!%p1849_p3), %v2208_v16  ;;  %v1269_v63 = vld [vmem:[#allocation9 + $0x60] sm:$0xff] (!%p1849_p3)  ;;  %v1270_v4 = vld [vmem:[#allocation9 + $0x68] sm:$0xff] (!%p1849_p3)  ;;  %v1278_v48 = vpack.c.bf16 (!%p1849_p3), %v1268_v50, %v1267_v47  ;;  %v1275_v55 = vpack.c.bf16 (!%p1849_p3), %v1262_v61, %v1261_v58  ;;  %v1263_v9 = vld [vmem:[#allocation9 + $0x30] sm:$0xff] (!%p1849_p3) }
 0x49a   :  { %2029 = vmatprep.subr.bf16.mxu0 (!%p1849_p3), %v2209_v32  ;;  %2075 = vmatprep.subr.bf16.mxu1 (!%p1849_p3), %v2209_v32  ;;  %v1279_v28 = vpack.c.bf16 (!%p1849_p3), %v1270_v4, %v1269_v63  ;;  %v1264_v30 = vld [vmem:[#allocation9 + $0x38] sm:$0xff] (!%p1849_p3)  ;;  %v1271_v33 = vld [vmem:[#allocation9 + $0x70] sm:$0xff] (!%p1849_p3)  ;;  %v1297_v35 = vld [vmem:[#allocation2] sm:$0xff] (!%p1849_p3) }
 0x49b   :  { %v1272_v34 = vld [vmem:[#allocation9 + $0x78] sm:$0xff]  ;;  %v1276_v10 = vpack.c.bf16 %v1264_v30, %v1263_v9  ;;  %v1299_v40 = vld [vmem:[#allocation2 + $0x10] sm:$0xff]  ;;  %v1305_v24 = vld [vmem:[#allocation2 + $0x40] sm:$0xff] }
 0x49c   :  { %v1280_v37 = vpack.c.bf16 %v1272_v34, %v1271_v33  ;;  %v1307_v6 = vld [vmem:[#allocation2 + $0x50] sm:$0xff]  ;;  %v1300_v20 = vld [vmem:[#allocation2 + $0x18] sm:$0xff]  ;;  %v1306_v17 = vld [vmem:[#allocation2 + $0x48] sm:$0xff] }
 0x49d   :  { %2030 = vmatpush3.bf16.msra.mxu0 %v2209_v32  ;;  %2083 = vmatpush3.bf16.msra.mxu1 %v2209_v32  ;;  %v1308_v36 = vld [vmem:[#allocation2 + $0x58] sm:$0xff]  ;;  %v1298_v16 = vld [vmem:[#allocation2 + $0x8] sm:$0xff]  ;;  %v1303_v31 = vld [vmem:[#allocation2 + $0x30] sm:$0xff] }
 0x49e   :  { %2031 = vmatprep.subr.bf16.mxu0 %v2210_v18  ;;  %2076 = vmatprep.subr.bf16.mxu1 %v2210_v18  ;;  %v1304_v22 = vld [vmem:[#allocation2 + $0x38] sm:$0xff]  ;;  %v1301_v47 = vld [vmem:[#allocation2 + $0x20] sm:$0xff]  ;;  %v1302_v50 = vld [vmem:[#allocation2 + $0x28] sm:$0xff] }
 0x49f   :  { %v1309_v63 = vld [vmem:[#allocation2 + $0x60] sm:$0xff]  ;;  %v1310_v4 = vld [vmem:[#allocation2 + $0x68] sm:$0xff] }
 0x4a1   :  { %2032 = vmatpush3.bf16.msra.mxu0 %v2210_v18  ;;  %2084 = vmatpush3.bf16.msra.mxu1 %v2210_v18 }
 0x4a2   :  { %2033 = vmatprep.subr.bf16.mxu0 %v2211_v56  ;;  %2077 = vmatprep.subr.bf16.mxu1 %v2211_v56 }
 0x4a5   :  { %2034 = vmatpush3.bf16.msra.mxu0 %v2211_v56  ;;  %2085 = vmatpush3.bf16.msra.mxu1 %v2211_v56 }
 0x4a6   :  { %2035 = vmatprep.subr.bf16.mxu0 %v2212_v23  ;;  %2078 = vmatprep.subr.bf16.mxu1 %v2212_v23 }
 0x4a9   :  { %2036 = vmatpush3.bf16.msra.mxu0 %v2212_v23  ;;  %2086 = vmatpush3.bf16.msra.mxu1 %v2212_v23 }
 0x4aa   :  { %2037 = vmatprep.subr.bf16.mxu0 %v2213_v15  ;;  %2079 = vmatprep.subr.bf16.mxu1 %v2213_v15 }
 0x4ad   :  { %2038 = vmatpush3.bf16.msra.mxu0 %v2213_v15  ;;  %2087 = vmatpush3.bf16.msra.mxu1 %v2213_v15  ;;  %v1311_v15 = vld [vmem:[#allocation2 + $0x70] sm:$0xff] }
 0x4ae   :  { %2039 = vmatprep.subr.bf16.mxu0 %v2214_v25  ;;  %2080 = vmatprep.subr.bf16.mxu1 %v2214_v25 }
 0x4b1   :  { %2040 = vmatpush3.bf16.msra.mxu0 %v2214_v25  ;;  %2088 = vmatpush3.bf16.msra.mxu1 %v2214_v25  ;;  %v1312_v25 = vld [vmem:[#allocation2 + $0x78] sm:$0xff] }
 0x4b4   :  { %2042 = vmatmul.mubr.bf16.vlgmr.msra.gmra.mrb[0].mxu0 %v1274_v7  ;;  %2050 = vmatmul.mubr.bf16.vlgmr.msra.gmra.mrb[0].mxu1 %v1278_v48 }
 0x4b5   :  { %2045 = vmatprep.mubr.bf16.mxu0 %v1275_v55  ;;  %2053 = vmatprep.mubr.bf16.mxu1 %v1279_v28 }
 0x4bc   :  { %2046 = vmatmul.mubr.bf16.gmra.mrb[4].mxu0 %v1276_v10  ;;  %2054 = vmatmul.mubr.bf16.gmra.mrb[4].mxu1 %v1280_v37 }
 0x587   :  { %v2043_v57 = vpop.f32.mrb[0].mxu0  ;;  %v2051_v14 = vpop.f32.mrb[0].mxu1 }
 0x588   :  { %v2825_v42 = vadd.f32 %v2043_v57, %v1299_v40  ;;  %v2827_v44 = vadd.f32 %v2051_v14, %v1307_v6  ;;  %v1395_v45 = vpop.f32.mrb[1].mxu0  ;;  %v1427_v46 = vpop.f32.mrb[1].mxu1 }
 0x589   :  { %v2044_v52 = vpop.f32.mrb[2].mxu0  ;;  %v2052_v54 = vpop.f32.mrb[2].mxu1  ;;  %v2831_v59 = vadd.f32 %v1395_v45, %v1297_v35  ;;  %v2837_v43 = vadd.f32 %v1427_v46, %v1305_v24 }
 0x58a   :  { %1478 = vadd.xlane.f32.xlu0 %v2827_v44  ;;  %v1430_v27 = vpop.f32.mrb[3].mxu1  ;;  %1462 = vadd.xlane.f32.xlu1 %v2825_v42  ;;  %v1398_v39 = vpop.f32.mrb[3].mxu0  ;;  %v2833_v60 = vadd.f32 %v2044_v52, %v1300_v20  ;;  %v2839_v3 = vadd.f32 %v2052_v54, %v1308_v36  ;;  %v1508_v49 = vmul.f32 %v2825_v42, %v2825_v42 }
 0x58b   :  { %v2843_v13 = vadd.f32 %v1430_v27, %v1306_v17  ;;  %v1516_v53 = vmul.f32 %v2827_v44, %v2827_v44  ;;  %v2852_v32 = vadd.f32 %v1398_v39, %v1298_v16  ;;  %v1506_v21 = vmul.f32 %v2831_v59, %v2831_v59 }
 0x58c   :  { %v1509_v41 = vmul.f32 %v2833_v60, %v2833_v60  ;;  %v1517_v18 = vmul.f32 %v2839_v3, %v2839_v3  ;;  %v1514_v8 = vmul.f32 %v2837_v43, %v2837_v43 }
 0x58d   :  { %v1507_v19 = vmul.f32 %v2852_v32, %v2852_v32  ;;  %v1515_v1 = vmul.f32 %v2843_v13, %v2843_v13 }
 0x58e   :  { %1464 = vadd.xlane.f32.xlu1 %v2833_v60  ;;  %1458 = vadd.xlane.f32.xlu0 %v2831_v59 }
 0x58f   :  { %v2047_v0 = vpop.f32.mrb[4].mxu0  ;;  %v2055_v2 = vpop.f32.mrb[4].mxu1 }
 0x590   :  { %v1411_v38 = vpop.f32.mrb[5].mxu0  ;;  %v1443_v5 = vpop.f32.mrb[5].mxu1  ;;  %v2865_v56 = vadd.f32 %v2047_v0, %v1303_v31  ;;  %v2871_v26 = vadd.f32 %v2055_v2, %v1311_v15 }
 0x591   :  { %v2048_v62 = vpop.f32.mrb[6].mxu0  ;;  %v2056_v29 = vpop.f32.mrb[6].mxu1  ;;  %v2877_v58 = vadd.f32 %v1411_v38, %v1301_v47  ;;  %v2883_v7 = vadd.f32 %v1443_v5, %v1309_v63 }
 0x592   :  { %1480 = vadd.xlane.f32.xlu1 %v2839_v3  ;;  %1474 = vadd.xlane.f32.xlu0 %v2837_v43  ;;  %v1414_v51 = vpop.f32.mrb[7].mxu0  ;;  %v1446_v11 = vpop.f32.mrb[7].mxu1  ;;  %v2867_v23 = vadd.f32 %v2048_v62, %v1304_v22  ;;  %v2873_v12 = vadd.f32 %v2056_v29, %v1312_v25  ;;  %v1512_v28 = vmul.f32 %v2865_v56, %v2865_v56 }
 0x593   :  { %v2879_v61 = vadd.f32 %v1414_v51, %v1302_v50  ;;  %v2885_v48 = vadd.f32 %v1446_v11, %v1310_v4  ;;  %v1510_v30 = vmul.f32 %v2877_v58, %v2877_v58  ;;  %v1518_v34 = vmul.f32 %v2883_v7, %v2883_v7 }
 0x594   :  { %v1513_v55 = vmul.f32 %v2867_v23, %v2867_v23  ;;  %v1521_v10 = vmul.f32 %v2873_v12, %v2873_v12  ;;  %v1520_v37 = vmul.f32 %v2871_v26, %v2871_v26 }
 0x595   :  { %v1511_v9 = vmul.f32 %v2879_v61, %v2879_v61  ;;  %v1519_v33 = vmul.f32 %v2885_v48, %v2885_v48 }
 0x596   :  { %1476 = vadd.xlane.f32.xlu1 %v2843_v13  ;;  %1526 = vadd.xlane.f32.xlu0 %v1508_v49 }
 0x59a   :  { %1528 = vadd.xlane.f32.xlu1 %v1509_v41  ;;  %1542 = vadd.xlane.f32.xlu0 %v1516_v53 }
 0x59e   :  { %1544 = vadd.xlane.f32.xlu1 %v1517_v18  ;;  %1460 = vadd.xlane.f32.xlu0 %v2852_v32 }
 0x5a2   :  { %1524 = vadd.xlane.f32.xlu1 %v1507_v19  ;;  %1522 = vadd.xlane.f32.xlu0 %v1506_v21 }
 0x5a6   :  { %1540 = vadd.xlane.f32.xlu1 %v1515_v1  ;;  %1538 = vadd.xlane.f32.xlu0 %v1514_v8 }
 0x5aa   :  { %1472 = vadd.xlane.f32.xlu1 %v2867_v23  ;;  %1470 = vadd.xlane.f32.xlu0 %v2865_v56 }
 0x5ae   :  { %1488 = vadd.xlane.f32.xlu1 %v2873_v12  ;;  %1486 = vadd.xlane.f32.xlu0 %v2871_v26 }
 0x5b2   :  { %1468 = vadd.xlane.f32.xlu1 %v2879_v61  ;;  %1466 = vadd.xlane.f32.xlu0 %v2877_v58 }
 0x5b6   :  { %1484 = vadd.xlane.f32.xlu1 %v2885_v48  ;;  %1482 = vadd.xlane.f32.xlu0 %v2883_v7 }
 0x5ba   :  { %1536 = vadd.xlane.f32.xlu1 %v1513_v55  ;;  %1534 = vadd.xlane.f32.xlu0 %v1512_v28 }
 0x5be   :  { %1532 = vadd.xlane.f32.xlu1 %v1511_v9  ;;  %1530 = vadd.xlane.f32.xlu0 %v1510_v30 }
 0x5c2   :  { %1548 = vadd.xlane.f32.xlu1 %v1519_v33  ;;  %1546 = vadd.xlane.f32.xlu0 %v1518_v34 }
 0x5c6   :  { %1552 = vadd.xlane.f32.xlu1 %v1521_v10  ;;  %1550 = vadd.xlane.f32.xlu0 %v1520_v37  ;;  %v2937_v37 = vld [vmem:[%s3069_s13] ss:$0 sm:$0xff] }
 0x617   :  { %v1479_v40 = vpop.xlane.xlu0 %1478  ;;  %v1463_v6 = vpop.xlane.xlu1 %1462 }
 0x618   :  { %v1492_v35 = vmul.f32 0.125, %v1463_v6  ;;  %v2905_v20 = vmul.f32 0.125, %v1479_v40 }
 0x61a   :  { %v1572_v27 = vmul.f32 %v1492_v35, %v1492_v35  ;;  %v1580_v0 = vmul.f32 %v2905_v20, %v2905_v20  ;;  %v1604_v33 = vsub.f32 %v2825_v42, %v1492_v35  ;;  %v2942_v42 = vld [vmem:[%s3070_s14] ss:$0 sm:$0xff] }
 0x61b   :  { %v1465_v57 = vpop.xlane.xlu1 %1464  ;;  %v1459_v14 = vpop.xlane.xlu0 %1458 }
 0x61c   :  { %v2907_v39 = vmul.f32 0.125, %v1465_v57  ;;  %v2915_v41 = vmul.f32 0.125, %v1459_v14 }
 0x61e   :  { %v1573_v17 = vmul.f32 %v2907_v39, %v2907_v39  ;;  %v1570_v22 = vmul.f32 %v2915_v41, %v2915_v41 }
 0x61f   :  { %v1481_v45 = vpop.xlane.xlu1 %1480  ;;  %v1475_v46 = vpop.xlane.xlu0 %1474 }
 0x620   :  { %v2911_v2 = vmul.f32 0.125, %v1481_v45  ;;  %v2923_v15 = vmul.f32 0.125, %v1475_v46 }
 0x622   :  { %v1581_v53 = vmul.f32 %v2911_v2, %v2911_v2  ;;  %v1578_v34 = vmul.f32 %v2923_v15, %v2923_v15 }
 0x623   :  { %v1477_v52 = vpop.xlane.xlu1 %1476  ;;  %v1527_v54 = vpop.xlane.xlu0 %1526 }
 0x624   :  { %v1556_v24 = vmul.f32 0.125, %v1527_v54  ;;  %v2925_v25 = vmul.f32 0.125, %v1477_v52 }
 0x626   :  { %v1588_v36 = vsub.f32 %v1556_v24, %v1572_v27  ;;  %v1579_v10 = vmul.f32 %v2925_v25, %v2925_v25  ;;  %v1605_v24 = vsub.f32 %v2833_v60, %v2907_v39  ;;  %v1613_v60 = vsub.f32 %v2839_v3, %v2911_v2 }
 0x627   :  { %v1529_v38 = vpop.xlane.xlu1 %1528  ;;  %v1543_v5 = vpop.xlane.xlu0 %1542 }
 0x628   :  { %v1620_v62 = vadd.f32 1e-05, %v1588_v36  ;;  %v1557_v29 = vmul.f32 0.125, %v1529_v38  ;;  %v1564_v51 = vmul.f32 0.125, %v1543_v5 }
 0x62a   :  { %2215 = vrsqrt.f32 %v1620_v62  ;;  %v1589_v11 = vsub.f32 %v1557_v29, %v1573_v17  ;;  %v1596_v49 = vsub.f32 %v1564_v51, %v1580_v0  ;;  %v1612_v17 = vsub.f32 %v2827_v44, %v2905_v20 }
 0x62b   :  { %v1545_v16 = vpop.xlane.xlu1 %1544  ;;  %v1461_v18 = vpop.xlane.xlu0 %1460 }
 0x62c   :  { %v1621_v19 = vadd.f32 1e-05, %v1589_v11  ;;  %v1628_v21 = vadd.f32 1e-05, %v1596_v49  ;;  %v1565_v1 = vmul.f32 0.125, %v1545_v16  ;;  %v2919_v8 = vmul.f32 0.125, %v1461_v18 }
 0x62e   :  { %2217 = vrsqrt.f32 %v1621_v19  ;;  %v1597_v31 = vsub.f32 %v1565_v1, %v1581_v53  ;;  %v1571_v4 = vmul.f32 %v2919_v8, %v2919_v8  ;;  %v1603_v2 = vsub.f32 %v2852_v32, %v2919_v8 }
 0x62f   :  { %2219 = vrsqrt.f32 %v1628_v21  ;;  %v1525_v47 = vpop.xlane.xlu1 %1524  ;;  %v1523_v50 = vpop.xlane.xlu0 %1522 }
 0x630   :  { %v1629_v63 = vadd.f32 1e-05, %v1597_v31  ;;  %v1555_v55 = vmul.f32 0.125, %v1525_v47  ;;  %v1554_v28 = vmul.f32 0.125, %v1523_v50 }
 0x632   :  { %2221 = vrsqrt.f32 %v1629_v63  ;;  %v1587_v9 = vsub.f32 %v1555_v55, %v1571_v4  ;;  %v1586_v30 = vsub.f32 %v1554_v28, %v1570_v22  ;;  %v1602_v4 = vsub.f32 %v2831_v59, %v2915_v41 }
 0x633   :  { %v1541_v40 = vpop.xlane.xlu1 %1540  ;;  %v1539_v6 = vpop.xlane.xlu0 %1538 }
 0x634   :  { %v2216_v57 = vpop.eup %2215  ;;  %v1619_v14 = vadd.f32 1e-05, %v1587_v9  ;;  %v1618_v45 = vadd.f32 1e-05, %v1586_v30  ;;  %v1563_v46 = vmul.f32 0.125, %v1541_v40  ;;  %v1562_v52 = vmul.f32 0.125, %v1539_v6 }
 0x635   :  { %v1652_v54 = vmul.f32 %v2216_v57, %v1604_v33  ;;  %v1610_v57 = vsub.f32 %v2837_v43, %v2923_v15 }
 0x636   :  { %2223 = vrsqrt.f32 %v1619_v14  ;;  %v1595_v35 = vsub.f32 %v1563_v46, %v1579_v10  ;;  %v1594_v27 = vsub.f32 %v1562_v52, %v1578_v34  ;;  %v1611_v10 = vsub.f32 %v2843_v13, %v2925_v25 }
 0x637   :  { %v1675_v36 = vmul.f32 %v2937_v37, %v1652_v54  ;;  %2225 = vrsqrt.f32 %v1618_v45  ;;  %v1473_v0 = vpop.xlane.xlu1 %1472  ;;  %v1471_v38 = vpop.xlane.xlu0 %1470 }
 0x638   :  { %v2218_v5 = vpop.eup %2217  ;;  %v1627_v62 = vadd.f32 1e-05, %v1595_v35  ;;  %v1626_v29 = vadd.f32 1e-05, %v1594_v27  ;;  %v2966_v34 = vmul.f32 0.125, %v1473_v0  ;;  %v2971_v40 = vmul.f32 0.125, %v1471_v38 }
 0x639   :  { %v2220_v51 = vpop.eup %2219  ;;  %v1698_v11 = vadd.f32 %v2942_v42, %v1675_v36  ;;  %v1653_v49 = vmul.f32 %v2218_v5, %v1605_v24 }
 0x63a   :  { %v1660_v53 = vmul.f32 %v2220_v51, %v1612_v17  ;;  %2227 = vrsqrt.f32 %v1627_v62  ;;  %v1577_v54 = vmul.f32 %v2966_v34, %v2966_v34  ;;  %v1576_v24 = vmul.f32 %v2971_v40, %v2971_v40 }
 0x63b   :  { %v1714_v39 = vmax.f32 %v1698_v11, 0.0  ;;  %v1676_v16 = vmul.f32 %v2937_v37, %v1653_v49  ;;  %2229 = vrsqrt.f32 %v1626_v29  ;;  %v2953_v18 = vpop.xlane.xlu1 %1488  ;;  %v2955_v19 = vpop.xlane.xlu0 %1486 }
 0x63c   :  { %v2222_v44 = vpop.eup %2221  ;;  %v1683_v20 = vmul.f32 %v2937_v37, %v1660_v53 }
 0x63d   :  { %1730 = vst [vmem:[#allocation20 + $0x10] sm:$0xff] %v1714_v39  ;;  %v1699_v21 = vadd.f32 %v2942_v42, %v1676_v16  ;;  %v1661_v1 = vmul.f32 %v2222_v44, %v1613_v60 }
 0x63e   :  { %v1706_v31 = vadd.f32 %v2942_v42, %v1683_v20 }
 0x63f   :  { %v1715_v22 = vmax.f32 %v1699_v21, 0.0  ;;  %v1684_v3 = vmul.f32 %v2937_v37, %v1661_v1  ;;  %v1469_v47 = vpop.xlane.xlu1 %1468  ;;  %v1467_v50 = vpop.xlane.xlu0 %1466 }
 0x640   :  { %v2224_v63 = vpop.eup %2223  ;;  %v1722_v55 = vmax.f32 %v1706_v31, 0.0  ;;  %v2983_v43 = vmul.f32 0.125, %v1469_v47  ;;  %v2987_v29 = vmul.f32 0.125, %v1467_v50  ;;  %v2999_v47 = vmul.f32 0.125, %v2953_v18 }
 0x641   :  { %v2226_v28 = vpop.eup %2225  ;;  %1731 = vst [vmem:[#allocation20 + $0x18] sm:$0xff] %v1715_v22  ;;  %v1707_v9 = vadd.f32 %v2942_v42, %v1684_v3  ;;  %v1651_v30 = vmul.f32 %v2224_v63, %v1603_v2  ;;  %v3002_v63 = vmul.f32 0.125, %v2955_v19 }
 0x642   :  { %1738 = vst [vmem:[#allocation20 + $0x50] sm:$0xff] %v1722_v55  ;;  %v1650_v33 = vmul.f32 %v2226_v28, %v1602_v4  ;;  %v1575_v60 = vmul.f32 %v2983_v43, %v2983_v43  ;;  %v1574_v3 = vmul.f32 %v2987_v29, %v2987_v29  ;;  %v1585_v19 = vmul.f32 %v2999_v47, %v2999_v47 }
 0x643   :  { %v1723_v32 = vmax.f32 %v1707_v9, 0.0  ;;  %v1674_v8 = vmul.f32 %v2937_v37, %v1651_v30  ;;  %v1485_v6 = vpop.xlane.xlu1 %1484  ;;  %v1483_v59 = vpop.xlane.xlu0 %1482 }
 0x644   :  { %v2228_v41 = vpop.eup %2227  ;;  %v1673_v14 = vmul.f32 %v2937_v37, %v1650_v33  ;;  %v2992_v39 = vmul.f32 0.125, %v1485_v6  ;;  %v2994_v16 = vmul.f32 0.125, %v1483_v59  ;;  %v1584_v59 = vmul.f32 %v3002_v63, %v3002_v63 }
 0x645   :  { %v2230_v45 = vpop.eup %2229  ;;  %1739 = vst [vmem:[#allocation20 + $0x58] sm:$0xff] %v1723_v32  ;;  %v1697_v46 = vadd.f32 %v2942_v42, %v1674_v8  ;;  %v1659_v52 = vmul.f32 %v2228_v41, %v1611_v10 }
 0x646   :  { %v1696_v13 = vadd.f32 %v2942_v42, %v1673_v14  ;;  %v1658_v25 = vmul.f32 %v2230_v45, %v1610_v57  ;;  %v1583_v4 = vmul.f32 %v2992_v39, %v2992_v39  ;;  %v1582_v30 = vmul.f32 %v2994_v16, %v2994_v16 }
 0x647   :  { %v1713_v35 = vmax.f32 %v1697_v46, 0.0  ;;  %v1682_v27 = vmul.f32 %v2937_v37, %v1659_v52  ;;  %v1537_v15 = vpop.xlane.xlu1 %1536  ;;  %v1535_v36 = vpop.xlane.xlu0 %1534 }
 0x648   :  { %v1712_v0 = vmax.f32 %v1696_v13, 0.0  ;;  %v1681_v38 = vmul.f32 %v2937_v37, %v1658_v25  ;;  %v1561_v5 = vmul.f32 0.125, %v1537_v15  ;;  %v1560_v17 = vmul.f32 0.125, %v1535_v36 }
 0x649   :  { %1729 = vst [vmem:[#allocation20 + $0x8] sm:$0xff] %v1713_v35  ;;  %v1705_v62 = vadd.f32 %v2942_v42, %v1682_v27  ;;  %v1608_v27 = vsub.f32 %v2865_v56, %v2971_v40 }
 0x64a   :  { %1728 = vst [vmem:[#allocation20] sm:$0xff] %v1712_v0  ;;  %v1704_v51 = vadd.f32 %v2942_v42, %v1681_v38  ;;  %v1593_v11 = vsub.f32 %v1561_v5, %v1577_v54  ;;  %v1592_v49 = vsub.f32 %v1560_v17, %v1576_v24  ;;  %v1609_v54 = vsub.f32 %v2867_v23, %v2966_v34 }
 0x64b   :  { %v1721_v53 = vmax.f32 %v1705_v62, 0.0  ;;  %v1533_v44 = vpop.xlane.xlu1 %1532  ;;  %v1531_v20 = vpop.xlane.xlu0 %1530  ;;  %v1607_v5 = vsub.f32 %v2879_v61, %v2983_v43  ;;  %v1606_v23 = vsub.f32 %v2877_v58, %v2987_v29 }
 0x64c   :  { %v1720_v21 = vmax.f32 %v1704_v51, 0.0  ;;  %v1625_v1 = vadd.f32 1e-05, %v1593_v11  ;;  %v1624_v31 = vadd.f32 1e-05, %v1592_v49  ;;  %v1559_v22 = vmul.f32 0.125, %v1533_v44 }
 0x64d   :  { %1737 = vst [vmem:[#allocation20 + $0x48] sm:$0xff] %v1721_v53  ;;  %v1558_v2 = vmul.f32 0.125, %v1531_v20  ;;  %v1615_v53 = vsub.f32 %v2885_v48, %v2992_v39  ;;  %v1614_v44 = vsub.f32 %v2883_v7, %v2994_v16  ;;  %v1617_v48 = vsub.f32 %v2873_v12, %v2999_v47 }
 0x64e   :  { %1736 = vst [vmem:[#allocation20 + $0x40] sm:$0xff] %v1720_v21  ;;  %2231 = vrsqrt.f32 %v1625_v1  ;;  %v1591_v50 = vsub.f32 %v1559_v22, %v1575_v60  ;;  %v1616_v7 = vsub.f32 %v2871_v26, %v3002_v63 }
 0x64f   :  { %2233 = vrsqrt.f32 %v1624_v31  ;;  %v1590_v55 = vsub.f32 %v1558_v2, %v1574_v3  ;;  %v1549_v28 = vpop.xlane.xlu1 %1548  ;;  %v1547_v9 = vpop.xlane.xlu0 %1546 }
 0x650   :  { %v1623_v33 = vadd.f32 1e-05, %v1591_v50  ;;  %v1567_v10 = vmul.f32 0.125, %v1549_v28  ;;  %v1566_v32 = vmul.f32 0.125, %v1547_v9 }
 0x651   :  { %v1622_v18 = vadd.f32 1e-05, %v1590_v55 }
 0x652   :  { %2235 = vrsqrt.f32 %v1623_v33  ;;  %v1599_v8 = vsub.f32 %v1567_v10, %v1583_v4  ;;  %v1598_v6 = vsub.f32 %v1566_v32, %v1582_v30 }
 0x653   :  { %2237 = vrsqrt.f32 %v1622_v18  ;;  %v1553_v41 = vpop.xlane.xlu1 %1552  ;;  %v1551_v57 = vpop.xlane.xlu0 %1550 }
 0x654   :  { %v1631_v14 = vadd.f32 1e-05, %v1599_v8  ;;  %v1630_v45 = vadd.f32 1e-05, %v1598_v6  ;;  %v1569_v46 = vmul.f32 0.125, %v1553_v41  ;;  %v1568_v52 = vmul.f32 0.125, %v1551_v57 }
 0x656   :  { %2239 = vrsqrt.f32 %v1631_v14  ;;  %v1601_v13 = vsub.f32 %v1569_v46, %v1585_v19  ;;  %v1600_v25 = vsub.f32 %v1568_v52, %v1584_v59 }
 0x657   :  { %2241 = vrsqrt.f32 %v1630_v45 }
 0x658   :  { %v2232_v35 = vpop.eup %2231  ;;  %v1633_v24 = vadd.f32 1e-05, %v1601_v13  ;;  %v1632_v15 = vadd.f32 1e-05, %v1600_v25 }
 0x659   :  { %v2234_v36 = vpop.eup %2233  ;;  %v1657_v0 = vmul.f32 %v2232_v35, %v1609_v54 }
 0x65a   :  { %v1656_v38 = vmul.f32 %v2234_v36, %v1608_v27  ;;  %2243 = vrsqrt.f32 %v1633_v24 }
 0x65b   :  { %v1680_v17 = vmul.f32 %v2937_v37, %v1657_v0  ;;  %2245 = vrsqrt.f32 %v1632_v15 }
 0x65c   :  { %v2236_v62 = vpop.eup %2235  ;;  %v1679_v34 = vmul.f32 %v2937_v37, %v1656_v38 }
 0x65d   :  { %v2238_v51 = vpop.eup %2237  ;;  %v1703_v56 = vadd.f32 %v2942_v42, %v1680_v17  ;;  %v1655_v40 = vmul.f32 %v2236_v62, %v1607_v5 }
 0x65e   :  { %v1702_v11 = vadd.f32 %v2942_v42, %v1679_v34  ;;  %v1654_v49 = vmul.f32 %v2238_v51, %v1606_v23 }
 0x65f   :  { %v1719_v61 = vmax.f32 %v1703_v56, 0.0  ;;  %v1678_v43 = vmul.f32 %v2937_v37, %v1655_v40 }
 0x660   :  { %v2240_v60 = vpop.eup %2239  ;;  %v1718_v58 = vmax.f32 %v1702_v11, 0.0  ;;  %v1677_v29 = vmul.f32 %v2937_v37, %v1654_v49 }
 0x661   :  { %v2242_v20 = vpop.eup %2241  ;;  %1735 = vst [vmem:[#allocation20 + $0x38] sm:$0xff] %v1719_v61  ;;  %v1701_v21 = vadd.f32 %v2942_v42, %v1678_v43  ;;  %v1663_v1 = vmul.f32 %v2240_v60, %v1615_v53 }
 0x662   :  { %1734 = vst [vmem:[#allocation20 + $0x30] sm:$0xff] %v1718_v58  ;;  %v1700_v31 = vadd.f32 %v2942_v42, %v1677_v29  ;;  %v1662_v22 = vmul.f32 %v2242_v20, %v1614_v44 }
 0x663   :  { %v1717_v39 = vmax.f32 %v1701_v21, 0.0  ;;  %v1686_v3 = vmul.f32 %v2937_v37, %v1663_v1 }
 0x664   :  { %v2244_v2 = vpop.eup %2243  ;;  %v1716_v16 = vmax.f32 %v1700_v31, 0.0  ;;  %v1685_v50 = vmul.f32 %v2937_v37, %v1662_v22 }
 0x665   :  { %v2246_v4 = vpop.eup %2245  ;;  %1733 = vst [vmem:[#allocation20 + $0x28] sm:$0xff] %v1717_v39  ;;  %v1709_v55 = vadd.f32 %v2942_v42, %v1686_v3  ;;  %v1665_v28 = vmul.f32 %v2244_v2, %v1617_v48 }
 0x666   :  { %1732 = vst [vmem:[#allocation20 + $0x20] sm:$0xff] %v1716_v16  ;;  %v1708_v9 = vadd.f32 %v2942_v42, %v1685_v50  ;;  %v1664_v30 = vmul.f32 %v2246_v4, %v1616_v7 }
 0x667   :  { %v1725_v12 = vmax.f32 %v1709_v55, 0.0  ;;  %v1688_v47 = vmul.f32 %v2937_v37, %v1665_v28 }
 0x668   :  { %v1724_v33 = vmax.f32 %v1708_v9, 0.0  ;;  %v1687_v10 = vmul.f32 %v2937_v37, %v1664_v30 }
 0x669   :  { %1741 = vst [vmem:[#allocation20 + $0x68] sm:$0xff] %v1725_v12  ;;  %v1711_v26 = vadd.f32 %v2942_v42, %v1688_v47 }
 0x66a   :  { %1740 = vst [vmem:[#allocation20 + $0x60] sm:$0xff] %v1724_v33  ;;  %v1710_v63 = vadd.f32 %v2942_v42, %v1687_v10 }
 0x66b   :  { %v1727_v32 = vmax.f32 %v1711_v26, 0.0 }
 0x66c   :  { %v1726_v18 = vmax.f32 %v1710_v63, 0.0 }
 0x66d   :  { %1743 = vst [vmem:[#allocation20 + $0x78] sm:$0xff] %v1727_v32 }
 0x66e   :  { %1742 = vst [vmem:[#allocation20 + $0x70] sm:$0xff] %v1726_v18 }
 0x66f PF:  { %s1746_s13 = sld [smem:[#allocation4]]  ;;  %s2430_s14 = smov [#allocation20]  }
 0x670   :  { %s1753_s18 = sshll.u32 %s2430_s14, 4  ;;  %s1754_s18 = int_to_ptr.vmem [resolvable:$true] %s1753_s18 }
 0x671   :  { %s2383_s24 = scalar_lea.vmem %s1754_s18, 2048  ;;  %p2388_p5 = scmp.lt.s32.totalorder %s1754_s18, %s1754_s18 }
 0x672   :  { %p2384_p4 = scmp.ne.s32.totalorder %s1754_s18, %s2383_s24  ;;  %p2389_p6 = scmp.lt.s32.totalorder %s2383_s24, %s2383_s24 }
 0x674   :  { %p2390_p7 = por %p2389_p6, %p2388_p5 }
 0x675   :  { %s1864_s5 = sshll.u32 %s1746_s13, 11 }
 0x676   :  { %s1752_s19 = scalar_lea.hbm %s3071_s15, %s1864_s5  ;;  %p2391_p8 = pnand %p2390_p7, %p2384_p4 }
 0x678   :  { %2394 = shalt.err (!%p2391_p8)
}
 0x679   :  { %s2395_s4 = scalar_lea.hbm %s1752_s19, 2048  ;;  %s2397_s25 = scalar_lea.hbm %s3071_s15, 2048 }
 0x67a   :  { %p2396_p9 = scmp.ne.s32.totalorder %s1752_s19, %s2395_s4  ;;  %p2398_p10 = scmp.lt.u32.totalorder %s1752_s19, %s3071_s15 }
 0x67b   :  { %p2399_p11 = scmp.lt.u32.totalorder %s2397_s25, %s2395_s4  ;;  %p2401_p13 = scmp.lt.u32.totalorder %s2395_s4, %s1752_s19 }
 0x67d   :  { %p2400_p12 = por %p2399_p11, %p2398_p10 }
 0x67f   :  { %p2402_p0 = por %p2401_p13, %p2400_p12 }
 0x681   :  { %p2403_p1 = pnand %p2402_p0, %p2396_p9 }
 0x683   :  { %2406 = shalt.err (!%p2403_p1)
}
 0x684   :  { %1759 = dma.vmem_to_hbm [thread:$0]  %s1754_s18, 2048, %s1752_s19, [#allocation11], %s2418_s21, %s2418_s21, %s2419_s22  }
 0x685   :  { %2415 = dma.done.wait [#allocation11], 2048  }
 0x686   :  { %2416 = vsyncadd [#allocation11], 4294965248 }
 0x687   :  { %1763 = vsyncpa [#allocation10], 1 }
 0x688   :  { %1764 = vsyncpa [#allocation13], 1 }
 0x689   :  { %1765 = vsyncpa [#allocation16], 1 }
 0x68a   :  { %1766 = vsyncpa [#allocation19], 1 }
 0x68b   :  { %1767 = vsyncpa [#allocation11], 1 }

</bundles_post_ra>
